<compile_context>
chip_gen: v7x
topology: tpu7x:2x2x1
jax: 0.10.0
libtpu: 0.0.40
codegen_flags: <defaults>
</compile_context>

<pallas_src>
import jax
import jax.numpy as jnp
from jax.experimental import pallas as pl
from jax.experimental.pallas import tpu as pltpu

H1 = 512      # padded 400 (lane-aligned)
H2 = 384      # padded 300 (lane-aligned)
TB_MAX = 1024 # max batch-tile rows


def _round_up(x, m):
    return ((x + m - 1) // m) * m


def critic_kernel(x_ref,
                  w1_ref, b14_ref,
                  w2_ref, b2_ref, w5_ref, b5_ref,
                  w3_ref, b3_ref, w6_ref, b6_ref,
                  q_ref):
    """Twin-Q MLP on one (TB, KPAD) batch tile. bf16 MXU ops, f32 accumulate."""
    x = x_ref[...]                                   # (TB, KPAD) bf16

    # Fused layer 1 for both heads: [h_pre | g_pre] = x @ W1 + b14
    z = jnp.dot(x, w1_ref[...], preferred_element_type=jnp.float32) + b14_ref[...]
    z = jnp.maximum(z, 0.0)
    h = z[:, :H1].astype(jnp.bfloat16)               # Q1-head activations
    g = z[:, H1:].astype(jnp.bfloat16)               # Q2-head activations

    # Layer 2 (per head), lane-aligned 512x384 bf16 matmuls, f32 accumulation.
    h2 = jnp.maximum(
        jnp.dot(h, w2_ref[...], preferred_element_type=jnp.float32) + b2_ref[...], 0.0)
    g2 = jnp.maximum(
        jnp.dot(g, w5_ref[...], preferred_element_type=jnp.float32) + b5_ref[...], 0.0)

    # Layer 3: output width 1 -> broadcast multiply + lane reduction (VPU/XLU)
    # in f32; the two columns are stored as one (TB, 2) output.
    q1 = jnp.sum(h2 * w3_ref[...], axis=-1, keepdims=True) + b3_ref[...]
    q2 = jnp.sum(g2 * w6_ref[...], axis=-1, keepdims=True) + b6_ref[...]
    q_ref[...] = jnp.concatenate([q1, q2], axis=-1)


def init_critic_params(key, state_dim, action_dim):
    """Logical params matching nn.Linear default init, stored as (in, out)."""
    in_dim = state_dim + action_dim
    dims = [
        (in_dim, 400), (400, 300), (300, 1),   # l1, l2, l3 (Q1 head)
        (in_dim, 400), (400, 300), (300, 1),   # l4, l5, l6 (Q2 head)
    ]
    params = []
    for (fan_in, fan_out) in dims:
        key, kw, kb = jax.random.split(key, 3)
        bound = 1.0 / jnp.sqrt(float(fan_in))
        w = jax.random.uniform(kw, (fan_in, fan_out), jnp.float32, -bound, bound)
        b = jax.random.uniform(kb, (1, fan_out), jnp.float32, -bound, bound)
        params.extend([w, b])
    return tuple(params)


def pack_critic_params(params):
    """Fuse/zero-pad logical params into the lane-aligned bf16 kernel layout."""
    w1, b1, w2, b2, w3, b3, w4, b4, w5, b5, w6, b6 = params
    in_dim = w1.shape[0]
    kpad = _round_up(in_dim, 128)

    def pad2(x, rows, cols):
        return jnp.pad(x, ((0, rows - x.shape[0]), (0, cols - x.shape[1])))

    # Fused layer 1: columns [0:H1] = Q1 head, [H1:2*H1] = Q2 head; rows
    # zero-padded to KPAD so the wrapper's [state | action | 0...] input
    # multiplies exactly (zero weights contribute nothing).
    w14 = jnp.concatenate(
        [pad2(w1, kpad, H1), pad2(w4, kpad, H1)], axis=1).astype(jnp.bfloat16)
    b14 = jnp.concatenate([pad2(b1, 1, H1), pad2(b4, 1, H1)], axis=1)  # f32

    w2p = pad2(w2, H1, H2).astype(jnp.bfloat16)
    w5p = pad2(w5, H1, H2).astype(jnp.bfloat16)
    b2p, b5p = pad2(b2, 1, H2), pad2(b5, 1, H2)                        # f32
    w3r = pad2(w3.T, 1, H2)        # (1, H2) f32 row vector for VPU reduction
    w6r = pad2(w6.T, 1, H2)
    b3p = b3.reshape(1, 1)
    b6p = b6.reshape(1, 1)
    return (w14, b14, w2p, b2p, w5p, b5p, w3r, b3p, w6r, b6p)


@jax.jit
def critic_forward(state, action, packed):
    """Equivalent of Critic.forward(state, action) -> (q1, q2)."""
    B, sd = state.shape
    ad = action.shape[1]
    in_dim = sd + ad

    w14, b14, w2p, b2p, w5p, b5p, w3r, b3p, w6r, b6p = packed
    kpad = w14.shape[0]

    # Balanced batch tiling:
    #  - tiles no larger than TB_MAX (keeps f32 temporaries ~7 MiB at 1024),
    #  - at least 2 tiles when B >= 16 so the "parallel" axis gives v7x's
    #    second TensorCore work,
    #  - TB = round_up(cdiv(B, n_tiles), 8) avoids padding to a full extra tile.
    B8 = _round_up(max(B, 1), 8)
    n_tiles = max(pl.cdiv(B8, TB_MAX), 2 if B8 >= 16 else 1)
    TB = _round_up(pl.cdiv(B8, n_tiles), 8)
    B_pad = TB * n_tiles

    # Pre-pack [state | action] into one lane-aligned bf16 input slab.
    x = jnp.concatenate([state, action], axis=1).astype(jnp.bfloat16)
    x = jnp.pad(x, ((0, B_pad - B), (0, kpad - in_dim)))

    def full(arr):  # whole-array block, VMEM-resident across batch tiles
        return pl.BlockSpec(arr.shape, lambda i: (0, 0))

    weights = (w14, b14, w2p, b2p, w5p, b5p, w3r, b3p, w6r, b6p)
    param_bytes = sum(int(p.size) * p.dtype.itemsize for p in weights)
    flops = (2 * B_pad * kpad * (2 * H1)        # fused layer 1
             + 2 * 2 * B_pad * H1 * H2          # layer 2, both heads
             + 2 * 2 * B_pad * H2)              # layer 3, both heads
    bytes_accessed = 2 * B_pad * kpad + param_bytes + 4 * B_pad * 2

    q = pl.pallas_call(
        critic_kernel,
        out_shape=jax.ShapeDtypeStruct((B_pad, 2), jnp.float32),
        grid=(n_tiles,),
        in_specs=[
            pl.BlockSpec((TB, kpad), lambda i: (i, 0)),   # packed input tile
            full(w14), full(b14),
            full(w2p), full(b2p), full(w5p), full(b5p),
            full(w3r), full(b3p), full(w6r), full(b6p),
        ],
        out_specs=pl.BlockSpec((TB, 2), lambda i: (i, 0)),
        compiler_params=pltpu.CompilerParams(
            dimension_semantics=("parallel",),
            vmem_limit_bytes=32 * 1024 * 1024),
        cost_estimate=pl.CostEstimate(
            flops=flops, transcendentals=0, bytes_accessed=bytes_accessed),
    )(x, *weights)

    return q[:B, 0:1], q[:B, 1:2]


def critic_forward_ref(state, action, params):
    """Pure-JAX f32 reference (mirrors the PyTorch module exactly)."""
    x = jnp.concatenate([state, action], axis=1)
    w1, b1, w2, b2, w3, b3, w4, b4, w5, b5, w6, b6 = params
    h = jnp.maximum(x @ w1 + b1, 0.0)
    h = jnp.maximum(h @ w2 + b2, 0.0)
    q1 = h @ w3 + b3
    g = jnp.maximum(x @ w4 + b4, 0.0)
    g = jnp.maximum(g @ w5 + b5, 0.0)
    q2 = g @ w6 + b6
    return q1, q2


if __name__ == "__main__":
    key = jax.random.PRNGKey(0)
    state_dim, action_dim, batch = 8, 4, 2

    k_params, k_state, k_action, k_big = jax.random.split(key, 4)
    params = init_critic_params(k_params, state_dim, action_dim)
    packed = pack_critic_params(params)

    # bf16 operands -> loosened tolerance vs the f32 reference (deliberate).
    ATOL = RTOL = 5e-2

    # Small-batch check (single tile).
    state = jax.random.normal(k_state, (batch, state_dim), jnp.float32)
    action = jax.random.normal(k_action, (batch, action_dim), jnp.float32)
    q1, q2 = critic_forward(state, action, packed)
    jax.block_until_ready((q1, q2))
    q1_ref, q2_ref = critic_forward_ref(state, action, params)
    assert q1.shape == (batch, 1) and q2.shape == (batch, 1)
    assert jnp.allclose(q1, q1_ref, atol=ATOL, rtol=RTOL)
    assert jnp.allclose(q2, q2_ref, atol=ATOL, rtol=RTOL)

    # Multi-tile check (exercises balanced batch tiles + tail padding:
    # B=300 -> 2 tiles of 152, both TensorCores busy on v7x).
    big_b = 300
    ks, ka = jax.random.split(k_big)
    big_state = jax.random.normal(ks, (big_b, state_dim), jnp.float32)
    big_action = jax.random.normal(ka, (big_b, action_dim), jnp.float32)
    bq1, bq2 = critic_forward(big_state, big_action, packed)
    jax.block_until_ready((bq1, bq2))
    bq1_ref, bq2_ref = critic_forward_ref(big_state, big_action, params)
    assert bq1.shape == (big_b, 1) and bq2.shape == (big_b, 1)
    assert jnp.allclose(bq1, bq1_ref, atol=ATOL, rtol=RTOL)
    assert jnp.allclose(bq2, bq2_ref, atol=ATOL, rtol=RTOL)

    print("KERNEL_OK")
</pallas_src>

<mosaic_0001>
module attributes {stable_mosaic.version = 11 : i64} {
  func.func @critic_kernel(%arg0: i32, %arg1: memref<8x128xbf16, #tpu.memory_space<vmem>>, %arg2: memref<128x1024xbf16, #tpu.memory_space<vmem>>, %arg3: memref<1x1024xf32, #tpu.memory_space<vmem>>, %arg4: memref<512x384xbf16, #tpu.memory_space<vmem>>, %arg5: memref<1x384xf32, #tpu.memory_space<vmem>>, %arg6: memref<512x384xbf16, #tpu.memory_space<vmem>>, %arg7: memref<1x384xf32, #tpu.memory_space<vmem>>, %arg8: memref<1x384xf32, #tpu.memory_space<vmem>>, %arg9: memref<1x1xf32, #tpu.memory_space<vmem>>, %arg10: memref<1x384xf32, #tpu.memory_space<vmem>>, %arg11: memref<1x1xf32, #tpu.memory_space<vmem>>, %arg12: memref<8x2xf32, #tpu.memory_space<vmem>>) attributes {dimension_semantics = [#tpu.dimension_semantics<parallel>], iteration_bounds = array<i64: 1>, scalar_prefetch = 0 : i64, scratch_operands = 0 : i64, tpu.core_type = #tpu.core_type<tc>, window_params = [{transform_indices = @transform_0, window_bounds = array<i64: 8, 128>}, {pipeline_mode = #tpu.pipeline_mode<synchronous>, transform_indices = @transform_1, window_bounds = array<i64: 128, 1024>}, {pipeline_mode = #tpu.pipeline_mode<synchronous>, transform_indices = @transform_2, window_bounds = array<i64: 1, 1024>}, {pipeline_mode = #tpu.pipeline_mode<synchronous>, transform_indices = @transform_3, window_bounds = array<i64: 512, 384>}, {pipeline_mode = #tpu.pipeline_mode<synchronous>, transform_indices = @transform_4, window_bounds = array<i64: 1, 384>}, {pipeline_mode = #tpu.pipeline_mode<synchronous>, transform_indices = @transform_5, window_bounds = array<i64: 512, 384>}, {pipeline_mode = #tpu.pipeline_mode<synchronous>, transform_indices = @transform_6, window_bounds = array<i64: 1, 384>}, {pipeline_mode = #tpu.pipeline_mode<synchronous>, transform_indices = @transform_7, window_bounds = array<i64: 1, 384>}, {pipeline_mode = #tpu.pipeline_mode<synchronous>, transform_indices = @transform_8, window_bounds = array<i64: 1, 1>}, {pipeline_mode = #tpu.pipeline_mode<synchronous>, transform_indices = @transform_9, window_bounds = array<i64: 1, 384>}, {pipeline_mode = #tpu.pipeline_mode<synchronous>, transform_indices = @transform_10, window_bounds = array<i64: 1, 1>}, {transform_indices = @transform_11, window_bounds = array<i64: 8, 2>}]} {
    %c0 = arith.constant 0 : index
    %c0_0 = arith.constant 0 : index
    %0 = vector.load %arg1[%c0, %c0_0] : memref<8x128xbf16, #tpu.memory_space<vmem>>, vector<8x128xbf16>
    %c0_1 = arith.constant 0 : index
    %c0_2 = arith.constant 0 : index
    %1 = vector.load %arg2[%c0_1, %c0_2] : memref<128x1024xbf16, #tpu.memory_space<vmem>>, vector<128x1024xbf16>
    %cst = arith.constant dense<0.000000e+00> : vector<8x1024xf32>
    %2 = tpu.matmul %0, %1, %cst {dimension_numbers = #tpu.dot_dimension_numbers<[1], [0], [0], [1], [0, 0, 1, 1], [], []>} : vector<8x128xbf16>, vector<128x1024xbf16>, vector<8x1024xf32> -> vector<8x1024xf32>
    %c0_3 = arith.constant 0 : index
    %c0_4 = arith.constant 0 : index
    %3 = vector.load %arg3[%c0_3, %c0_4] : memref<1x1024xf32, #tpu.memory_space<vmem>>, vector<1x1024xf32>
    %4 = vector.broadcast %3 : vector<1x1024xf32> to vector<8x1024xf32>
    %5 = arith.addf %2, %4 : vector<8x1024xf32>
    %cst_5 = arith.constant 0.000000e+00 : f32
    %6 = vector.broadcast %cst_5 : f32 to vector<8x1024xf32>
    %7 = arith.maximumf %5, %6 : vector<8x1024xf32>
    %8 = vector.extract_strided_slice %7 {offsets = [0, 0], sizes = [8, 512], strides = [1, 1]} : vector<8x1024xf32> to vector<8x512xf32>
    %9 = arith.truncf %8 : vector<8x512xf32> to vector<8x512xbf16>
    %10 = vector.extract_strided_slice %7 {offsets = [0, 512], sizes = [8, 512], strides = [1, 1]} : vector<8x1024xf32> to vector<8x512xf32>
    %11 = arith.truncf %10 : vector<8x512xf32> to vector<8x512xbf16>
    %c0_6 = arith.constant 0 : index
    %c0_7 = arith.constant 0 : index
    %12 = vector.load %arg4[%c0_6, %c0_7] : memref<512x384xbf16, #tpu.memory_space<vmem>>, vector<512x384xbf16>
    %cst_8 = arith.constant dense<0.000000e+00> : vector<8x384xf32>
    %13 = tpu.matmul %9, %12, %cst_8 {dimension_numbers = #tpu.dot_dimension_numbers<[1], [0], [0], [1], [0, 0, 1, 1], [], []>} : vector<8x512xbf16>, vector<512x384xbf16>, vector<8x384xf32> -> vector<8x384xf32>
    %c0_9 = arith.constant 0 : index
    %c0_10 = arith.constant 0 : index
    %14 = vector.load %arg5[%c0_9, %c0_10] : memref<1x384xf32, #tpu.memory_space<vmem>>, vector<1x384xf32>
    %15 = vector.broadcast %14 : vector<1x384xf32> to vector<8x384xf32>
    %16 = arith.addf %13, %15 : vector<8x384xf32>
    %cst_11 = arith.constant 0.000000e+00 : f32
    %17 = vector.broadcast %cst_11 : f32 to vector<8x384xf32>
    %18 = arith.maximumf %16, %17 : vector<8x384xf32>
    %c0_12 = arith.constant 0 : index
    %c0_13 = arith.constant 0 : index
    %19 = vector.load %arg6[%c0_12, %c0_13] : memref<512x384xbf16, #tpu.memory_space<vmem>>, vector<512x384xbf16>
    %cst_14 = arith.constant dense<0.000000e+00> : vector<8x384xf32>
    %20 = tpu.matmul %11, %19, %cst_14 {dimension_numbers = #tpu.dot_dimension_numbers<[1], [0], [0], [1], [0, 0, 1, 1], [], []>} : vector<8x512xbf16>, vector<512x384xbf16>, vector<8x384xf32> -> vector<8x384xf32>
    %c0_15 = arith.constant 0 : index
    %c0_16 = arith.constant 0 : index
    %21 = vector.load %arg7[%c0_15, %c0_16] : memref<1x384xf32, #tpu.memory_space<vmem>>, vector<1x384xf32>
    %22 = vector.broadcast %21 : vector<1x384xf32> to vector<8x384xf32>
    %23 = arith.addf %20, %22 : vector<8x384xf32>
    %cst_17 = arith.constant 0.000000e+00 : f32
    %24 = vector.broadcast %cst_17 : f32 to vector<8x384xf32>
    %25 = arith.maximumf %23, %24 : vector<8x384xf32>
    %c0_18 = arith.constant 0 : index
    %c0_19 = arith.constant 0 : index
    %26 = vector.load %arg8[%c0_18, %c0_19] : memref<1x384xf32, #tpu.memory_space<vmem>>, vector<1x384xf32>
    %27 = vector.broadcast %26 : vector<1x384xf32> to vector<8x384xf32>
    %28 = arith.mulf %18, %27 : vector<8x384xf32>
    %cst_20 = arith.constant dense<0.000000e+00> : vector<8xf32>
    %29 = vector.multi_reduction <add>, %28, %cst_20 [1] : vector<8x384xf32> to vector<8xf32>
    %30 = vector.shape_cast %29 : vector<8xf32> to vector<8x1xf32>
    %c0_21 = arith.constant 0 : index
    %c0_22 = arith.constant 0 : index
    %31 = vector.load %arg9[%c0_21, %c0_22] : memref<1x1xf32, #tpu.memory_space<vmem>>, vector<1x1xf32>
    %32 = vector.broadcast %31 : vector<1x1xf32> to vector<8x1xf32>
    %33 = arith.addf %30, %32 : vector<8x1xf32>
    %c0_23 = arith.constant 0 : index
    %c0_24 = arith.constant 0 : index
    %34 = vector.load %arg10[%c0_23, %c0_24] : memref<1x384xf32, #tpu.memory_space<vmem>>, vector<1x384xf32>
    %35 = vector.broadcast %34 : vector<1x384xf32> to vector<8x384xf32>
    %36 = arith.mulf %25, %35 : vector<8x384xf32>
    %cst_25 = arith.constant dense<0.000000e+00> : vector<8xf32>
    %37 = vector.multi_reduction <add>, %36, %cst_25 [1] : vector<8x384xf32> to vector<8xf32>
    %38 = vector.shape_cast %37 : vector<8xf32> to vector<8x1xf32>
    %c0_26 = arith.constant 0 : index
    %c0_27 = arith.constant 0 : index
    %39 = vector.load %arg11[%c0_26, %c0_27] : memref<1x1xf32, #tpu.memory_space<vmem>>, vector<1x1xf32>
    %40 = vector.broadcast %39 : vector<1x1xf32> to vector<8x1xf32>
    %41 = arith.addf %38, %40 : vector<8x1xf32>
    %42 = tpu.concatenate %33, %41 in 1 : vector<8x1xf32>, vector<8x1xf32> -> vector<8x2xf32>
    %c0_28 = arith.constant 0 : index
    %c0_29 = arith.constant 0 : index
    %43 = vector.load %arg12[%c0_28, %c0_29] : memref<8x2xf32, #tpu.memory_space<vmem>>, vector<8x2xf32>
    tpu.vector_store %arg12[%c0_28, %c0_29], %42 {strides = array<i32>} : memref<8x2xf32, #tpu.memory_space<vmem>>, vector<8x2xf32>,
    return
  }
  func.func @transform_0(%arg0: i32) -> (i32, i32) {
    %c0_i32 = arith.constant 0 : i32
    %c0_i32_0 = arith.constant 0 : i32
    return %arg0, %c0_i32 : i32, i32
  }
  func.func @transform_1(%arg0: i32) -> (i32, i32) {
    %c0_i32 = arith.constant 0 : i32
    %c0_i32_0 = arith.constant 0 : i32
    %c0_i32_1 = arith.constant 0 : i32
    return %c0_i32, %c0_i32_0 : i32, i32
  }
  func.func @transform_2(%arg0: i32) -> (i32, i32) {
    %c0_i32 = arith.constant 0 : i32
    %c0_i32_0 = arith.constant 0 : i32
    %c0_i32_1 = arith.constant 0 : i32
    return %c0_i32, %c0_i32_0 : i32, i32
  }
  func.func @transform_3(%arg0: i32) -> (i32, i32) {
    %c0_i32 = arith.constant 0 : i32
    %c0_i32_0 = arith.constant 0 : i32
    %c0_i32_1 = arith.constant 0 : i32
    return %c0_i32, %c0_i32_0 : i32, i32
  }
  func.func @transform_4(%arg0: i32) -> (i32, i32) {
    %c0_i32 = arith.constant 0 : i32
    %c0_i32_0 = arith.constant 0 : i32
    %c0_i32_1 = arith.constant 0 : i32
    return %c0_i32, %c0_i32_0 : i32, i32
  }
  func.func @transform_5(%arg0: i32) -> (i32, i32) {
    %c0_i32 = arith.constant 0 : i32
    %c0_i32_0 = arith.constant 0 : i32
    %c0_i32_1 = arith.constant 0 : i32
    return %c0_i32, %c0_i32_0 : i32, i32
  }
  func.func @transform_6(%arg0: i32) -> (i32, i32) {
    %c0_i32 = arith.constant 0 : i32
    %c0_i32_0 = arith.constant 0 : i32
    %c0_i32_1 = arith.constant 0 : i32
    return %c0_i32, %c0_i32_0 : i32, i32
  }
  func.func @transform_7(%arg0: i32) -> (i32, i32) {
    %c0_i32 = arith.constant 0 : i32
    %c0_i32_0 = arith.constant 0 : i32
    %c0_i32_1 = arith.constant 0 : i32
    return %c0_i32, %c0_i32_0 : i32, i32
  }
  func.func @transform_8(%arg0: i32) -> (i32, i32) {
    %c0_i32 = arith.constant 0 : i32
    %c0_i32_0 = arith.constant 0 : i32
    %c0_i32_1 = arith.constant 0 : i32
    return %c0_i32, %c0_i32_0 : i32, i32
  }
  func.func @transform_9(%arg0: i32) -> (i32, i32) {
    %c0_i32 = arith.constant 0 : i32
    %c0_i32_0 = arith.constant 0 : i32
    %c0_i32_1 = arith.constant 0 : i32
    return %c0_i32, %c0_i32_0 : i32, i32
  }
  func.func @transform_10(%arg0: i32) -> (i32, i32) {
    %c0_i32 = arith.constant 0 : i32
    %c0_i32_0 = arith.constant 0 : i32
    %c0_i32_1 = arith.constant 0 : i32
    return %c0_i32, %c0_i32_0 : i32, i32
  }
  func.func @transform_11(%arg0: i32) -> (i32, i32) {
    %c0_i32 = arith.constant 0 : i32
    %c0_i32_0 = arith.constant 0 : i32
    return %arg0, %c0_i32 : i32, i32
  }
}

</mosaic_0001>

<bundles_post_ra>
// kernel: critic_forward.1
= control target key start
LH: loop header
LB: loop body
LE: loop exit
PB: predicated region body
PF: predicated region fallthrough
CT: control target
= control target key end

     0   :  { %s3312_s0 = inlined_call_operand.vmem [shape: bf16[8,128], index: 0, kind: input, shape index: {}]   ;;  %s3313_s1 = inlined_call_operand.hbm [shape: bf16[128,1024], index: 1, kind: input, shape index: {}]   ;;  %s3314_s2 = inlined_call_operand.vmem [shape: f32[1,1024], index: 2, kind: input, shape index: {}]   ;;  %s3315_s3 = inlined_call_operand.hbm [shape: bf16[512,384], index: 3, kind: input, shape index: {}]   ;;  %s3316_s4 = inlined_call_operand.vmem [shape: f32[1,384], index: 4, kind: input, shape index: {}]   ;;  %s3317_s5 = inlined_call_operand.hbm [shape: bf16[512,384], index: 5, kind: input, shape index: {}]   ;;  %s3318_s6 = inlined_call_operand.vmem [shape: f32[1,384], index: 6, kind: input, shape index: {}]   ;;  %s3319_s7 = inlined_call_operand.vmem [shape: f32[1,384], index: 7, kind: input, shape index: {}]   ;;  %s3320_s8 = inlined_call_operand.<no memory space> [shape: f32[1,1], index: 8, kind: input, shape index: {}]   ;;  %s3321_s9 = inlined_call_operand.vmem [shape: f32[1,384], index: 9, kind: input, shape index: {}]   ;;  %s3322_s11 = inlined_call_operand.vmem [shape: f32[8,2], index: 11, kind: output, shape index: {}]   ;;  %s3323_s10 = inlined_call_operand.<no memory space> [shape: f32[1,1], index: 10, kind: input, shape index: {}]  }
   0x1   :  { %v16_v0 = vstv %s3320_s8  ;;  %v18_v1 = vstv %s3323_s10 }
   0x2   :  { %17 = vst [vmem:[#allocation2] sm:$0x1] %v16_v0  ;;  %19 = vst [vmem:[#allocation3] sm:$0x1] %v18_v1 }
   0x3   :  { %20 = vsyncpa [#allocation5], 0 }
   0x4   :  { %21 = vsyncpa [#allocation7], 0  ;;  %s3106_s21 = smov [#allocation6]   ;;  %s3036_s25 = scalar_lea.hbm %s3315_s3, 12288 }
   0x5   :  { %s43_s22 = sshll.u32 %s3106_s21, 4  ;;  %p3037_p0 = scmp.ne.s32.totalorder %s3315_s3, %s3036_s25  ;;  %s44_s22 = int_to_ptr.vmem [resolvable:$true] %s43_s22 }
   0x6   :  { %p3040_p1 = scmp.lt.u32.totalorder %s3036_s25, %s3315_s3 }
   0x8   :  { %p3042_p2 = pnand %p3040_p1, %p3037_p0 }
   0xa   :  { %3045 = shalt.err (!%p3042_p2)
}
   0xb   :  { %s3046_s10 = scalar_lea.vmem %s44_s22, 12288  ;;  %p3051_p4 = scmp.lt.s32.totalorder %s44_s22, %s44_s22 }
   0xc   :  { %p3047_p3 = scmp.ne.s32.totalorder %s44_s22, %s3046_s10  ;;  %p3052_p5 = scmp.lt.s32.totalorder %s3046_s10, %s3046_s10 }
   0xe   :  { %p3053_p6 = por %p3052_p5, %p3051_p4 }
  0x10   :  { %p3054_p7 = pnand %p3053_p6, %p3047_p3 }
  0x12   :  { %3057 = shalt.err (!%p3054_p7)
}
  0x13   :  { %s3107_s29 = smov 192   ;;  %s3108_s30 = smov 12  }
  0x14   :  { %49 = dma.hbm_to_vmem [thread:$0]  %s3315_s3, 12288, %s44_s22, [#allocation7], %s3107_s29, %s3107_s29, %s3108_s30  }
  0x15   :  { %s3109_s14 = smov [#allocation4]   ;;  %s3058_s18 = scalar_lea.hbm %s3313_s1, 8192 }
  0x16   :  { %s29_s15 = sshll.u32 %s3109_s14, 4  ;;  %p3059_p8 = scmp.ne.s32.totalorder %s3313_s1, %s3058_s18  ;;  %s30_s15 = int_to_ptr.vmem [resolvable:$true] %s29_s15 }
  0x17   :  { %p3062_p9 = scmp.lt.u32.totalorder %s3058_s18, %s3313_s1 }
  0x19   :  { %p3064_p10 = pnand %p3062_p9, %p3059_p8 }
  0x1b   :  { %3067 = shalt.err (!%p3064_p10)
}
  0x1c   :  { %s3068_s24 = scalar_lea.vmem %s30_s15, 8192  ;;  %p3073_p12 = scmp.lt.s32.totalorder %s30_s15, %s30_s15 }
  0x1d   :  { %p3069_p11 = scmp.ne.s32.totalorder %s30_s15, %s3068_s24  ;;  %p3074_p13 = scmp.lt.s32.totalorder %s3068_s24, %s3068_s24 }
  0x1f   :  { %p3075_p0 = por %p3074_p13, %p3073_p12 }
  0x21   :  { %p3076_p1 = pnand %p3075_p0, %p3069_p11 }
  0x23   :  { %3079 = shalt.err (!%p3076_p1)
}
  0x24   :  { %s3110_s3 = smov 512   ;;  %s3111_s22 = smov 32  }
  0x25   :  { %35 = dma.hbm_to_vmem [thread:$0]  %s3313_s1, 8192, %s30_s15, [#allocation5], %s3110_s3, %s3110_s3, %s3111_s22  }
  0x26   :  { %s3112_s27 = smov [#allocation8]   ;;  %s3080_s12 = scalar_lea.hbm %s3317_s5, 12288 }
  0x27   :  { %s57_s8 = sshll.u32 %s3112_s27, 4  ;;  %p3081_p2 = scmp.ne.s32.totalorder %s3317_s5, %s3080_s12  ;;  %s58_s8 = int_to_ptr.vmem [resolvable:$true] %s57_s8 }
  0x28   :  { %p3084_p3 = scmp.lt.u32.totalorder %s3080_s12, %s3317_s5 }
  0x2a   :  { %p3086_p4 = pnand %p3084_p3, %p3081_p2 }
  0x2c   :  { %3089 = shalt.err (!%p3086_p4)
}
  0x2d   :  { %s3090_s18 = scalar_lea.vmem %s58_s8, 12288  ;;  %p3095_p6 = scmp.lt.s32.totalorder %s58_s8, %s58_s8 }
  0x2e   :  { %p3091_p5 = scmp.ne.s32.totalorder %s58_s8, %s3090_s18  ;;  %p3096_p7 = scmp.lt.s32.totalorder %s3090_s18, %s3090_s18 }
  0x30   :  { %p3097_p8 = por %p3096_p7, %p3095_p6 }
  0x32   :  { %p3098_p9 = pnand %p3097_p8, %p3091_p5 }
  0x34   :  { %3101 = shalt.err (!%p3098_p9)
}
  0x35   :  { %63 = dma.hbm_to_vmem [thread:$0]  %s3317_s5, 12288, %s58_s8, [#allocation7], %s3107_s29, %s3107_s29, %s3108_s30  }
  0x36   :  { %3102 = dma.done.wait [#allocation5], 8192  }
  0x37   :  { %3103 = vsyncadd [#allocation5], 4294959104 }
  0x38   :  { %3104 = dma.done.wait [#allocation7], 24576  }
  0x39   :  { %3105 = vsyncadd [#allocation7], 4294942720  ;;  %v3113_v2 = vmov 0   ;;  %v85_v3 = vld [vmem:[#allocation4] sm:$0xff]  ;;  %v86_v15 = vld [vmem:[#allocation4 + $0x8] sm:$0xff]  ;;  %vm2403_vm0 = vcmask 7168  }
  0x3a   :  { %543 = vmatprep.mubr.bf16.mxu0 %v3113_v2  ;;  %584 = vmatprep.mubr.bf16.mxu1 %v3113_v2  ;;  %v89_v4 = vld [vmem:[#allocation4 + $0x20] sm:$0xff]  ;;  %v90_v16 = vld [vmem:[#allocation4 + $0x28] sm:$0xff]  ;;  %v87_v62 = vld [vmem:[#allocation4 + $0x10] sm:$0xff]  ;;  %vm2405_vm1 = vcmask 15360  }
  0x3b   :  { %v93_v5 = vld [vmem:[#allocation4 + $0x40] sm:$0xff]  ;;  %v2414_v6 = vcombine.high %v85_v3, %v89_v4  ;;  %v2413_v7 = vcombine.low %v85_v3, %v89_v4  ;;  %v2416_v18 = vcombine.high %v86_v15, %v90_v16  ;;  %v2415_v19 = vcombine.low %v86_v15, %v90_v16  ;;  %v94_v20 = vld [vmem:[#allocation4 + $0x48] sm:$0xff]  ;;  %v91_v63 = vld [vmem:[#allocation4 + $0x30] sm:$0xff] }
  0x3c   :  { %v97_v8 = vld [vmem:[#allocation4 + $0x60] sm:$0xff]  ;;  %v98_v21 = vld [vmem:[#allocation4 + $0x68] sm:$0xff]  ;;  %v2418_v4 = vcombine.high %v87_v62, %v91_v63  ;;  %v107_v15 = vld [vmem:[#allocation4 + $0xb0] sm:$0xff] }
  0x3d   :  { %v2422_v9 = vcombine.high %v93_v5, %v97_v8  ;;  %v101_v10 = vld [vmem:[#allocation4 + $0x80] sm:$0xff]  ;;  %511 = vmatprep.subr.bf16.mxu0 %v2414_v6  ;;  %v2421_v12 = vcombine.low %v93_v5, %v97_v8  ;;  %v2424_v22 = vcombine.high %v94_v20, %v98_v21  ;;  %v102_v23 = vld [vmem:[#allocation4 + $0x88] sm:$0xff]  ;;  %552 = vmatprep.subr.bf16.mxu1 %v2416_v18  ;;  %v95_v5 = vld [vmem:[#allocation4 + $0x50] sm:$0xff] }
  0x3e   :  { %v105_v11 = vld [vmem:[#allocation4 + $0xa0] sm:$0xff]  ;;  %512 = vmatpush1.bf16.msra.mxu0 %v2413_v7  ;;  %v106_v24 = vld [vmem:[#allocation4 + $0xa8] sm:$0xff]  ;;  %553 = vmatpush1.bf16.msra.mxu1 %v2415_v19  ;;  %v2423_v27 = vcombine.low %v94_v20, %v98_v21  ;;  %v99_v7 = vld [vmem:[#allocation4 + $0x70] sm:$0xff] }
  0x3f   :  { %513 = vmatprep.subr.bf16.mxu0 %v2422_v9  ;;  %v2430_v13 = vcombine.high %v101_v10, %v105_v11  ;;  %v109_v14 = vld [vmem:[#allocation4 + $0xc0] sm:$0xff]  ;;  %v2429_v25 = vcombine.low %v101_v10, %v105_v11  ;;  %554 = vmatprep.subr.bf16.mxu1 %v2424_v22  ;;  %v2432_v30 = vcombine.high %v102_v23, %v106_v24  ;;  %v110_v31 = vld [vmem:[#allocation4 + $0xc8] sm:$0xff]  ;;  %v88_v8 = vld [vmem:[#allocation4 + $0x18] sm:$0xff] }
  0x40   :  { %v113_v17 = vld [vmem:[#allocation4 + $0xe0] sm:$0xff]  ;;  %v114_v32 = vld [vmem:[#allocation4 + $0xe8] sm:$0xff]  ;;  %v2431_v35 = vcombine.low %v102_v23, %v106_v24  ;;  %v92_v9 = vld [vmem:[#allocation4 + $0x38] sm:$0xff]  ;;  %v2417_v11 = vcombine.low %v87_v62, %v91_v63  ;;  %v2425_v19 = vcombine.low %v95_v5, %v99_v7 }
  0x41   :  { %v2438_v26 = vcombine.high %v109_v14, %v113_v17  ;;  %v117_v28 = vld [vmem:[#allocation4 + $0x100] sm:$0xff]  ;;  %v2437_v33 = vcombine.low %v109_v14, %v113_v17  ;;  %v2440_v38 = vcombine.high %v110_v31, %v114_v32  ;;  %v118_v39 = vld [vmem:[#allocation4 + $0x108] sm:$0xff]  ;;  %v2439_v43 = vcombine.low %v110_v31, %v114_v32  ;;  %v103_v14 = vld [vmem:[#allocation4 + $0x90] sm:$0xff] }
  0x42   :  { %514 = vmatpush1.bf16.msra.mxu0 %v2421_v12  ;;  %v121_v29 = vld [vmem:[#allocation4 + $0x120] sm:$0xff]  ;;  %555 = vmatpush1.bf16.msra.mxu1 %v2423_v27  ;;  %v122_v40 = vld [vmem:[#allocation4 + $0x128] sm:$0xff]  ;;  %v2420_v16 = vcombine.high %v88_v8, %v92_v9  ;;  %v96_v17 = vld [vmem:[#allocation4 + $0x58] sm:$0xff]  ;;  %v2434_v21 = vcombine.high %v103_v14, %v107_v15  ;;  %v2419_v23 = vcombine.low %v88_v8, %v92_v9 }
  0x43   :  { %515 = vmatprep.subr.bf16.mxu0 %v2430_v13  ;;  %v2446_v34 = vcombine.high %v117_v28, %v121_v29  ;;  %v125_v36 = vld [vmem:[#allocation4 + $0x140] sm:$0xff]  ;;  %556 = vmatprep.subr.bf16.mxu1 %v2432_v30  ;;  %v2445_v41 = vcombine.low %v117_v28, %v121_v29  ;;  %v2448_v46 = vcombine.high %v118_v39, %v122_v40  ;;  %v126_v47 = vld [vmem:[#allocation4 + $0x148] sm:$0xff]  ;;  %v100_v18 = vld [vmem:[#allocation4 + $0x78] sm:$0xff] }
  0x44   :  { %v129_v37 = vld [vmem:[#allocation4 + $0x160] sm:$0xff]  ;;  %v130_v48 = vld [vmem:[#allocation4 + $0x168] sm:$0xff]  ;;  %v2447_v52 = vcombine.low %v118_v39, %v122_v40  ;;  %v2426_v13 = vcombine.high %v95_v5, %v99_v7  ;;  %v111_v20 = vld [vmem:[#allocation4 + $0xd0] sm:$0xff]  ;;  %v2428_v24 = vcombine.high %v96_v17, %v100_v18  ;;  %v2433_v27 = vcombine.low %v103_v14, %v107_v15 }
  0x45   :  { %v2454_v42 = vcombine.high %v125_v36, %v129_v37  ;;  %v133_v44 = vld [vmem:[#allocation4 + $0x180] sm:$0xff]  ;;  %v2453_v49 = vcombine.low %v125_v36, %v129_v37  ;;  %v2456_v54 = vcombine.high %v126_v47, %v130_v48  ;;  %v134_v55 = vld [vmem:[#allocation4 + $0x188] sm:$0xff]  ;;  %v2455_v59 = vcombine.low %v126_v47, %v130_v48  ;;  %v115_v22 = vld [vmem:[#allocation4 + $0xf0] sm:$0xff] }
  0x46   :  { %516 = vmatpush1.bf16.msra.mxu0 %v2429_v25  ;;  %557 = vmatpush1.bf16.msra.mxu1 %v2431_v35  ;;  %v137_v45 = vld [vmem:[#allocation4 + $0x1a0] sm:$0xff]  ;;  %v138_v56 = vld [vmem:[#allocation4 + $0x1a8] sm:$0xff]  ;;  %v104_v25 = vld [vmem:[#allocation4 + $0x98] sm:$0xff]  ;;  %v2442_v28 = vcombine.high %v111_v20, %v115_v22  ;;  %v2427_v30 = vcombine.low %v96_v17, %v100_v18  ;;  %v2441_v35 = vcombine.low %v111_v20, %v115_v22 }
  0x47   :  { %517 = vmatprep.subr.bf16.mxu0 %v2438_v26  ;;  %558 = vmatprep.subr.bf16.mxu1 %v2440_v38  ;;  %v2462_v50 = vcombine.high %v133_v44, %v137_v45  ;;  %v141_v51 = vld [vmem:[#allocation4 + $0x1c0] sm:$0xff]  ;;  %v2461_v57 = vcombine.low %v133_v44, %v137_v45  ;;  %v142_v60 = vld [vmem:[#allocation4 + $0x1c8] sm:$0xff]  ;;  %v2464_v61 = vcombine.high %v134_v55, %v138_v56  ;;  %v108_v26 = vld [vmem:[#allocation4 + $0xb8] sm:$0xff] }
  0x48   :  { %v145_v53 = vld [vmem:[#allocation4 + $0x1e0] sm:$0xff]  ;;  %v146_v0 = vld [vmem:[#allocation4 + $0x1e8] sm:$0xff]  ;;  %v2463_v3 = vcombine.low %v134_v55, %v138_v56  ;;  %v119_v29 = vld [vmem:[#allocation4 + $0x110] sm:$0xff]  ;;  %v2436_v32 = vcombine.high %v104_v25, %v108_v26  ;;  %v2435_v38 = vcombine.low %v104_v25, %v108_v26 }
  0x49   :  { %v2470_v58 = vcombine.high %v141_v51, %v145_v53  ;;  %v2469_v1 = vcombine.low %v141_v51, %v145_v53  ;;  %v2472_v6 = vcombine.high %v142_v60, %v146_v0  ;;  %v3228_v10 = vld [vmem:[%s3312_s0] sm:$0xf]  ;;  %v2471_v12 = vcombine.low %v142_v60, %v146_v0  ;;  %v123_v31 = vld [vmem:[#allocation4 + $0x130] sm:$0xff]  ;;  %v2783_v9 = vld [vmem:[#allocation6 + $0x18] ss:$12 sps:$4 sm:$0xff]  }
  0x4a   :  { %518 = vmatpush1.bf16.msra.mxu0 %v2437_v33  ;;  %559 = vmatpush1.bf16.msra.mxu1 %v2439_v43  ;;  %v112_v33 = vld [vmem:[#allocation4 + $0xd8] sm:$0xff]  ;;  %v2450_v36 = vcombine.high %v119_v29, %v123_v31  ;;  %v127_v37 = vld [vmem:[#allocation4 + $0x150] sm:$0xff]  ;;  %v2449_v43 = vcombine.low %v119_v29, %v123_v31  ;;  %v2780_v5 = vld [vmem:[#allocation6] ss:$12 sps:$4 sm:$0xff]  }
  0x4b   :  { %519 = vmatprep.subr.bf16.mxu0 %v2446_v34  ;;  %560 = vmatprep.subr.bf16.mxu1 %v2448_v46  ;;  %v116_v34 = vld [vmem:[#allocation4 + $0xf8] sm:$0xff]  ;;  %v131_v39 = vld [vmem:[#allocation4 + $0x170] sm:$0xff]  ;;  %v2792_v22 = vld [vmem:[#allocation6 + $0x60] ss:$12 sps:$4 sm:$0xff]  }
  0x4c   :  { %v2444_v40 = vcombine.high %v112_v33, %v116_v34  ;;  %v135_v44 = vld [vmem:[#allocation4 + $0x190] sm:$0xff]  ;;  %v2458_v45 = vcombine.high %v127_v37, %v131_v39  ;;  %v2443_v46 = vcombine.low %v112_v33, %v116_v34  ;;  %v128_v48 = vld [vmem:[#allocation4 + $0x158] sm:$0xff]  ;;  %v2833_v31 = vld [vmem:[#allocation6 + $0x80] ss:$12 sps:$4 sm:$0xff]  }
  0x4d   :  { %v143_v51 = vld [vmem:[#allocation4 + $0x1d0] sm:$0xff]  ;;  %v136_v55 = vld [vmem:[#allocation4 + $0x198] sm:$0xff]  ;;  %v2804_v34 = vld [vmem:[#allocation6 + $0xc0] ss:$12 sps:$4 sm:$0xff]  }
  0x4e   :  { %520 = vmatpush1.bf16.msra.mxu0 %v2445_v41  ;;  %561 = vmatpush1.bf16.msra.mxu1 %v2447_v52  ;;  %v120_v41 = vld [vmem:[#allocation4 + $0x118] sm:$0xff]  ;;  %v147_v52 = vld [vmem:[#allocation4 + $0x1f0] sm:$0xff] }
  0x4f   :  { %521 = vmatprep.subr.bf16.mxu0 %v2454_v42  ;;  %562 = vmatprep.subr.bf16.mxu1 %v2456_v54  ;;  %v124_v42 = vld [vmem:[#allocation4 + $0x138] sm:$0xff]  ;;  %v2782_v0 = vld [vmem:[#allocation6 + $0x4] ss:$12 sps:$4 sm:$0xff]   ;;  %v2807_v7 = vld [vmem:[#allocation6 + $0xc8] ss:$12 sps:$4 sm:$0xff]  }
  0x50   :  { %v2452_v47 = vcombine.high %v120_v41, %v124_v42  ;;  %v2451_v54 = vcombine.low %v120_v41, %v124_v42  ;;  %v140_v56 = vld [vmem:[#allocation4 + $0x1b8] sm:$0xff]  ;;  %v2789_v18 = vld [vmem:[#allocation6 + $0x48] ss:$12 sps:$4 sm:$0xff]   ;;  %v2806_v33 = vld [vmem:[#allocation6 + $0xc4] ss:$12 sps:$4 sm:$0xff]  }
  0x51   :  { %v148_v62 = vld [vmem:[#allocation4 + $0x1f8] sm:$0xff]  ;;  %v2468_v63 = vcombine.high %v136_v55, %v140_v56  ;;  %v2827_v25 = vld [vmem:[#allocation6 + $0x128] ss:$12 sps:$4 sm:$0xff]   ;;  %v2826_v41 = vld [vmem:[#allocation6 + $0x124] ss:$12 sps:$4 sm:$0xff]  }
  0x52   :  { %522 = vmatpush1.bf16.msra.mxu0 %v2453_v49  ;;  %563 = vmatpush1.bf16.msra.mxu1 %v2455_v59  ;;  %v132_v49 = vld [vmem:[#allocation4 + $0x178] sm:$0xff]  ;;  %v2474_v59 = vcombine.high %v143_v51, %v147_v52  ;;  %v2800_v26 = vld [vmem:[#allocation6 + $0x94] ss:$12 sps:$4 sm:$0xff]  }
  0x53   :  { %523 = vmatprep.subr.bf16.mxu0 %v2462_v50  ;;  %564 = vmatprep.subr.bf16.mxu1 %v2464_v61  ;;  %v2457_v50 = vcombine.low %v127_v37, %v131_v39  ;;  %v2459_v60 = vcombine.low %v128_v48, %v132_v49  ;;  %v144_v61 = vld [vmem:[#allocation4 + $0x1d8] sm:$0xff]  ;;  %v2816_v37 = vld [vmem:[#allocation6 + $0xf4] ss:$12 sps:$4 sm:$0xff]  }
  0x54   :  { %v2475_v8 = vcombine.low %v144_v61, %v148_v62  ;;  %v2786_v14 = vld [vmem:[#allocation6 + $0x30] ss:$12 sps:$4 sm:$0xff]   ;;  %v2791_v15 = vld [vmem:[#allocation6 + $0x4c] ss:$12 sps:$4 sm:$0xff]  }
  0x55   :  { %v2817_v17 = vld [vmem:[#allocation6 + $0xf8] ss:$12 sps:$4 sm:$0xff]   ;;  %v2798_v29 = vld [vmem:[#allocation6 + $0x90] ss:$12 sps:$4 sm:$0xff]   ;;  %v2824_v42 = vld [vmem:[#allocation6 + $0x120] ss:$12 sps:$4 sm:$0xff]  }
  0x56   :  { %524 = vmatpush1.bf16.msra.mxu0 %v2461_v57  ;;  %565 = vmatpush1.bf16.msra.mxu1 %v2463_v3  ;;  %v2460_v57 = vcombine.high %v128_v48, %v132_v49  ;;  %v2467_v3 = vcombine.low %v136_v55, %v140_v56  ;;  %v2818_v20 = vld [vmem:[#allocation6 + $0x38] ss:$12 sps:$4 sm:$0xff]   ;;  %v2842_v48 = vld [vmem:[#allocation6 + $0x170] ss:$12 sps:$4 sm:$0xff]  }
  0x57   :  { %525 = vmatprep.subr.bf16.mxu0 %v2470_v58  ;;  %566 = vmatprep.subr.bf16.mxu1 %v2472_v6  ;;  %v2785_v6 = vld [vmem:[#allocation6 + $0x1c] ss:$12 sps:$4 sm:$0xff]   ;;  %v2821_v39 = vld [vmem:[#allocation6 + $0x10c] ss:$12 sps:$4 sm:$0xff]  }
  0x58   :  { %v2841_v49 = vld [vmem:[#allocation6 + $0x16c] ss:$12 sps:$4 sm:$0xff]  }
  0x5a   :  { %526 = vmatpush1.bf16.msra.mxu0 %v2469_v1  ;;  %567 = vmatpush1.bf16.msra.mxu1 %v2471_v12  ;;  %v2473_v1 = vcombine.low %v143_v51, %v147_v52  ;;  %v2808_v12 = vld [vmem:[#allocation6 + $0x8] ss:$12 sps:$4 sm:$0xff]  }
  0x5b   :  { %593 = vmatprep.subr.bf16.mxu0 %v2418_v4  ;;  %634 = vmatprep.subr.bf16.mxu1 %v2420_v16  ;;  %v2476_v4 = vcombine.high %v144_v61, %v148_v62  ;;  %v2813_v16 = vld [vmem:[#allocation6 + $0x20] ss:$12 sps:$4 sm:$0xff]   ;;  %v2839_v51 = vld [vmem:[#allocation6 + $0x168] ss:$12 sps:$4 sm:$0xff]  }
  0x5c   :  { %v2847_v52 = vld [vmem:[#allocation6 + $0x248] ss:$12 sps:$4 sm:$0xff]  }
  0x5d   :  { %544 = vmatmul.mubr.bf16.vlgmr.msra.gmra.mrb[0].mxu0 %v3228_v10  ;;  %585 = vmatmul.mubr.bf16.vlgmr.msra.gmra.mrb[0].mxu1 %v3228_v10 }
  0x5e   :  { %594 = vmatpush1.bf16.msra.mxu0 %v2417_v11  ;;  %625 = vmatprep.mubr.bf16.mxu0 %v3113_v2  ;;  %v2788_v11 = vld [vmem:[#allocation6 + $0x34] ss:$12 sps:$4 sm:$0xff]  }
  0x5f   :  { %595 = vmatprep.subr.bf16.mxu0 %v2426_v13  ;;  %635 = vmatpush1.bf16.msra.mxu1 %v2419_v23  ;;  %v2812_v13 = vld [vmem:[#allocation6 + $0xe0] ss:$12 sps:$4 sm:$0xff]   ;;  %v2797_v23 = vld [vmem:[#allocation6 + $0x7c] ss:$12 sps:$4 sm:$0xff]  }
  0x60   :  { %636 = vmatprep.subr.bf16.mxu1 %v2428_v24  ;;  %666 = vmatprep.mubr.bf16.mxu1 %v3113_v2  ;;  %v139_v2 = vld [vmem:[#allocation4 + $0x1b0] sm:$0xff] }
  0x61   :  { %v2466_v53 = vcombine.high %v135_v44, %v139_v2  ;;  %v2465_v58 = vcombine.low %v135_v44, %v139_v2  ;;  %v2823_v24 = vld [vmem:[#allocation6 + $0x50] ss:$12 sps:$4 sm:$0xff]   ;;  %v2829_v44 = vld [vmem:[#allocation6 + $0x138] ss:$12 sps:$4 sm:$0xff]   ;;  %v2836_v2 = vld [vmem:[#allocation6 + $0x154] ss:$12 sps:$4 sm:$0xff]  }
  0x62   :  { %596 = vmatpush1.bf16.msra.mxu0 %v2425_v19  ;;  %v2794_v19 = vld [vmem:[#allocation6 + $0x64] ss:$12 sps:$4 sm:$0xff]  }
  0x63   :  { %597 = vmatprep.subr.bf16.mxu0 %v2434_v21  ;;  %637 = vmatpush1.bf16.msra.mxu1 %v2427_v30  ;;  %v2822_v21 = vld [vmem:[#allocation6 + $0x110] ss:$12 sps:$4 sm:$0xff]   ;;  %v2803_v30 = vld [vmem:[#allocation6 + $0xac] ss:$12 sps:$4 sm:$0xff]  }
  0x64   :  { %638 = vmatprep.subr.bf16.mxu1 %v2436_v32  ;;  %v2801_v32 = vld [vmem:[#allocation6 + $0xa8] ss:$12 sps:$4 sm:$0xff]  }
  0x66   :  { %598 = vmatpush1.bf16.msra.mxu0 %v2433_v27  ;;  %v2828_v27 = vld [vmem:[#allocation6 + $0x68] ss:$12 sps:$4 sm:$0xff]  }
  0x67   :  { %599 = vmatprep.subr.bf16.mxu0 %v2442_v28  ;;  %639 = vmatpush1.bf16.msra.mxu1 %v2435_v38  ;;  %v2832_v28 = vld [vmem:[#allocation6 + $0x140] ss:$12 sps:$4 sm:$0xff]   ;;  %v2814_v38 = vld [vmem:[#allocation6 + $0xf0] ss:$12 sps:$4 sm:$0xff]  }
  0x68   :  { %640 = vmatprep.subr.bf16.mxu1 %v2444_v40  ;;  %v2819_v40 = vld [vmem:[#allocation6 + $0x108] ss:$12 sps:$4 sm:$0xff]  }
  0x6a   :  { %600 = vmatpush1.bf16.msra.mxu0 %v2441_v35  ;;  %v2811_v35 = vld [vmem:[#allocation6 + $0xdc] ss:$12 sps:$4 sm:$0xff]  }
  0x6b   :  { %601 = vmatprep.subr.bf16.mxu0 %v2450_v36  ;;  %641 = vmatpush1.bf16.msra.mxu1 %v2443_v46  ;;  %v2809_v36 = vld [vmem:[#allocation6 + $0xd8] ss:$12 sps:$4 sm:$0xff]  }
  0x6c   :  { %642 = vmatprep.subr.bf16.mxu1 %v2452_v47  ;;  %v2838_v46 = vld [vmem:[#allocation6 + $0x98] ss:$12 sps:$4 sm:$0xff]   ;;  %v2834_v47 = vld [vmem:[#allocation6 + $0x150] ss:$12 sps:$4 sm:$0xff]  }
  0x6e   :  { %602 = vmatpush1.bf16.msra.mxu0 %v2449_v43  ;;  %v2831_v43 = vld [vmem:[#allocation6 + $0x13c] ss:$12 sps:$4 sm:$0xff]  }
  0x6f   :  { %603 = vmatprep.subr.bf16.mxu0 %v2458_v45  ;;  %643 = vmatpush1.bf16.msra.mxu1 %v2451_v54  ;;  %v2837_v45 = vld [vmem:[#allocation6 + $0x158] ss:$12 sps:$4 sm:$0xff]   ;;  %v151_v54 = vlaneseq }
  0x70   :  { %644 = vmatprep.subr.bf16.mxu1 %v2460_v57  ;;  %v3244_v57 = vld [vmem:[%s3314_s2] sm:$0xff] }
  0x71   :  { %v3236_v55 = vshrl.u32 %v151_v54, 7 }
  0x72   :  { %604 = vmatpush1.bf16.msra.mxu0 %v2457_v50  ;;  %v2843_v50 = vld [vmem:[#allocation6 + $0xb0] ss:$12 sps:$4 sm:$0xff]  }
  0x73   :  { %605 = vmatprep.subr.bf16.mxu0 %v2466_v53  ;;  %645 = vmatpush1.bf16.msra.mxu1 %v2459_v60  ;;  %v2846_v53 = vld [vmem:[#allocation6 + $0x184] ss:$12 sps:$4 sm:$0xff]   ;;  %v3239_v56 = vsub.s32 0, %v3236_v55  ;;  %v165_v61 = vsub.s32 3, %v3236_v55 }
  0x74   :  { %646 = vmatprep.subr.bf16.mxu1 %v2468_v63 }
  0x76   :  { %606 = vmatpush1.bf16.msra.mxu0 %v2465_v58  ;;  %v3247_v58 = vsub.s32 1, %v3236_v55 }
  0x77   :  { %607 = vmatprep.subr.bf16.mxu0 %v2474_v59  ;;  %647 = vmatpush1.bf16.msra.mxu1 %v2467_v3  ;;  %v154_v59 = vrot.slane %v3244_v57, %v3239_v56 }
  0x78   :  { %648 = vmatprep.subr.bf16.mxu1 %v2476_v4  ;;  %v158_v60 = vrot.slane %v3244_v57, %v3247_v58 }
  0x7a   :  { %608 = vmatpush1.bf16.msra.mxu0 %v2473_v1 }
  0x7b   :  { %1348 = vmatprep.subr.bf16.mxu0 %v2782_v0  ;;  %649 = vmatpush1.bf16.msra.mxu1 %v2475_v8 }
  0x7c   :  { %2671 = vmatprep.subr.bf16.mxu1 %v2807_v7 }
  0x7d   :  { %626 = vmatmul.mubr.bf16.vlgmr.msra.gmra.mrb[4].mxu0 %v3228_v10 }
  0x7e   :  { %1349 = vmatpush1.bf16.msra.mxu0 %v2780_v5  ;;  %667 = vmatmul.mubr.bf16.vlgmr.msra.gmra.mrb[4].mxu1 %v3228_v10  ;;  %v2795_v10 = vld [vmem:[#allocation6 + $0x78] ss:$12 sps:$4 sm:$0xff]  }
  0x7f   :  { %1350 = vmatprep.subr.bf16.mxu0 %v2785_v6  ;;  %2672 = vmatpush3.bf16.msra.mxu1 %v2808_v12  ;;  %v166_v6 = vrot.slane %v3244_v57, %v165_v61  ;;  %v2848_v12 = vld [vmem:[#allocation6 + $0x188] ss:$12 sps:$4 sm:$0xff]   ;;  %v2889_v61 = vld [vmem:[#allocation8 + $0x4] ss:$12 sps:$4 sm:$0xff]  }
  0x80   :  { %2673 = vmatprep.subr.bf16.mxu1 %v2812_v13 }
  0x82   :  { %1351 = vmatpush1.bf16.msra.mxu0 %v2783_v9 }
  0x83   :  { %1352 = vmatprep.subr.bf16.mxu0 %v2788_v11  ;;  %2674 = vmatpush3.bf16.msra.mxu1 %v2813_v16  ;;  %v2844_v11 = vld [vmem:[#allocation6 + $0x180] ss:$12 sps:$4 sm:$0xff]  }
  0x84   :  { %2675 = vmatprep.subr.bf16.mxu1 %v2817_v17  ;;  %v2852_v16 = vld [vmem:[#allocation6 + $0x260] ss:$12 sps:$4 sm:$0xff]  }
  0x86   :  { %1353 = vmatpush1.bf16.msra.mxu0 %v2786_v14 }
  0x87   :  { %1354 = vmatprep.subr.bf16.mxu0 %v2791_v15  ;;  %2676 = vmatpush3.bf16.msra.mxu1 %v2818_v20  ;;  %v2851_v15 = vld [vmem:[#allocation6 + $0x19c] ss:$12 sps:$4 sm:$0xff]  }
  0x88   :  { %2677 = vmatprep.subr.bf16.mxu1 %v2822_v21  ;;  %v2849_v21 = vld [vmem:[#allocation6 + $0x198] ss:$12 sps:$4 sm:$0xff]  }
  0x8a   :  { %1355 = vmatpush1.bf16.msra.mxu0 %v2789_v18 }
  0x8b   :  { %1356 = vmatprep.subr.bf16.mxu0 %v2794_v19  ;;  %2678 = vmatpush3.bf16.msra.mxu1 %v2823_v24  ;;  %v2857_v24 = vld [vmem:[#allocation6 + $0x278] ss:$12 sps:$4 sm:$0xff]  }
  0x8c   :  { %2679 = vmatprep.subr.bf16.mxu1 %v2827_v25 }
  0x8e   :  { %1357 = vmatpush1.bf16.msra.mxu0 %v2792_v22  ;;  %v2853_v22 = vld [vmem:[#allocation6 + $0x1a0] ss:$12 sps:$4 sm:$0xff]  }
  0x8f   :  { %1358 = vmatprep.subr.bf16.mxu0 %v2797_v23  ;;  %2680 = vmatpush3.bf16.msra.mxu1 %v2828_v27  ;;  %v2856_v23 = vld [vmem:[#allocation6 + $0x1b4] ss:$12 sps:$4 sm:$0xff]   ;;  %v2861_v27 = vld [vmem:[#allocation6 + $0x1cc] ss:$12 sps:$4 sm:$0xff]  }
  0x90   :  { %2681 = vmatprep.subr.bf16.mxu1 %v2832_v28  ;;  %v2862_v28 = vld [vmem:[#allocation6 + $0x290] ss:$12 sps:$4 sm:$0xff]  }
  0x92   :  { %1359 = vmatpush1.bf16.msra.mxu0 %v2795_v10  ;;  %v2854_v10 = vld [vmem:[#allocation6 + $0x1b0] ss:$12 sps:$4 sm:$0xff]  }
  0x93   :  { %1360 = vmatprep.subr.bf16.mxu0 %v2800_v26  ;;  %2682 = vmatpush3.bf16.msra.mxu1 %v2833_v31  ;;  %v2858_v26 = vld [vmem:[#allocation6 + $0x1b8] ss:$12 sps:$4 sm:$0xff]  }
  0x94   :  { %2683 = vmatprep.subr.bf16.mxu1 %v2837_v45  ;;  %v2866_v31 = vld [vmem:[#allocation6 + $0x1e4] ss:$12 sps:$4 sm:$0xff]  }
  0x95   :  { %v2874_v45 = vld [vmem:[#allocation6 + $0x210] ss:$12 sps:$4 sm:$0xff]  }
  0x96   :  { %1361 = vmatpush1.bf16.msra.mxu0 %v2798_v29  ;;  %v2859_v29 = vld [vmem:[#allocation6 + $0x1c8] ss:$12 sps:$4 sm:$0xff]  }
  0x97   :  { %1362 = vmatprep.subr.bf16.mxu0 %v2803_v30  ;;  %2684 = vmatpush3.bf16.msra.mxu1 %v2838_v46  ;;  %v2863_v30 = vld [vmem:[#allocation6 + $0x1d0] ss:$12 sps:$4 sm:$0xff]  }
  0x98   :  { %2685 = vmatprep.subr.bf16.mxu1 %v2842_v48  ;;  %v2882_v48 = vld [vmem:[#allocation6 + $0x2f0] ss:$12 sps:$4 sm:$0xff]  }
  0x9a   :  { %1363 = vmatpush1.bf16.msra.mxu0 %v2801_v32  ;;  %v2867_v32 = vld [vmem:[#allocation6 + $0x2a8] ss:$12 sps:$4 sm:$0xff]  }
  0x9b   :  { %1364 = vmatprep.subr.bf16.mxu0 %v2806_v33  ;;  %2686 = vmatpush3.bf16.msra.mxu1 %v2843_v50  ;;  %v3256_v33 = vsub.s32 2, %v3236_v55 }
  0x9c   :  { %2693 = vmatprep.subr.bf16.mxu1 %v2847_v52  ;;  %v2879_v52 = vld [vmem:[#allocation6 + $0x228] ss:$12 sps:$4 sm:$0xff]  }
  0x9e   :  { %1365 = vmatpush1.bf16.msra.mxu0 %v2804_v34  ;;  %v2864_v34 = vld [vmem:[#allocation6 + $0x1e0] ss:$12 sps:$4 sm:$0xff]  }
  0x9f   :  { %1366 = vmatprep.subr.bf16.mxu0 %v2811_v35  ;;  %v2868_v35 = vld [vmem:[#allocation6 + $0x1e8] ss:$12 sps:$4 sm:$0xff]  }
  0xa2   :  { %1367 = vmatpush1.bf16.msra.mxu0 %v2809_v36  ;;  %v2871_v36 = vld [vmem:[#allocation6 + $0x1fc] ss:$12 sps:$4 sm:$0xff]  }
  0xa3   :  { %1368 = vmatprep.subr.bf16.mxu0 %v2816_v37  ;;  %v2872_v37 = vld [vmem:[#allocation6 + $0x2c0] ss:$12 sps:$4 sm:$0xff]  }
  0xa6   :  { %1369 = vmatpush1.bf16.msra.mxu0 %v2814_v38  ;;  %v162_v38 = vrot.slane %v3244_v57, %v3256_v33 }
  0xa7   :  { %1370 = vmatprep.subr.bf16.mxu0 %v2821_v39  ;;  %v2869_v39 = vld [vmem:[#allocation6 + $0x1f8] ss:$12 sps:$4 sm:$0xff]  }
  0xaa   :  { %1371 = vmatpush1.bf16.msra.mxu0 %v2819_v40  ;;  %v2873_v40 = vld [vmem:[#allocation6 + $0x200] ss:$12 sps:$4 sm:$0xff]  }
  0xab   :  { %1372 = vmatprep.subr.bf16.mxu0 %v2826_v41  ;;  %v173_v41 = vsub.s32 5, %v3236_v55 }
  0xad   :  { %v174_v46 = vrot.slane %v3244_v57, %v173_v41  ;;  %v2936_v41 = vld [vmem:[#allocation8 + $0x8] ss:$12 sps:$4 sm:$0xff]  }
  0xae   :  { %1373 = vmatpush1.bf16.msra.mxu0 %v2824_v42  ;;  %v2876_v42 = vld [vmem:[#allocation6 + $0x214] ss:$12 sps:$4 sm:$0xff]  }
  0xaf   :  { %1374 = vmatprep.subr.bf16.mxu0 %v2831_v43  ;;  %v2877_v43 = vld [vmem:[#allocation6 + $0x2d8] ss:$12 sps:$4 sm:$0xff]  }
  0xb2   :  { %1375 = vmatpush1.bf16.msra.mxu0 %v2829_v44 }
  0xb3   :  { %1376 = vmatprep.subr.bf16.mxu0 %v2836_v2  ;;  %v2878_v2 = vld [vmem:[#allocation6 + $0x218] ss:$12 sps:$4 sm:$0xff]  }
  0xb6   :  { %1377 = vmatpush1.bf16.msra.mxu0 %v2834_v47  ;;  %v2881_v47 = vld [vmem:[#allocation6 + $0x22c] ss:$12 sps:$4 sm:$0xff]  }
  0xb7   :  { %1378 = vmatprep.subr.bf16.mxu0 %v2841_v49 }
  0xba   :  { %1379 = vmatpush1.bf16.msra.mxu0 %v2839_v51 }
  0xbb   :  { %1389 = vmatprep.subr.bf16.mxu0 %v2846_v53  ;;  %v2883_v53 = vld [vmem:[#allocation6 + $0x230] ss:$12 sps:$4 sm:$0xff]  }
 0x130   :  { %v545_v62 = vpop.f32.mrb[0].mxu0  ;;  %v586_v8 = vpop.f32.mrb[0].mxu1 }
 0x131   :  { %v546_v63 = vadd.f32 %v545_v62, %v154_v59  ;;  %v547_v0 = vpop.f32.mrb[1].mxu0  ;;  %v588_v13 = vpop.f32.mrb[1].mxu1  ;;  %v587_v44 = vadd.f32 %v586_v8, %v162_v38  ;;  %v2934_v38 = vld [vmem:[#allocation8 + $0xc4] ss:$12 sps:$4 sm:$0xff]  }
 0x132   :  { %v548_v1 = vadd.f32 %v547_v0, %v158_v60  ;;  %v549_v3 = vpop.f32.mrb[2].mxu0  ;;  %v589_v17 = vadd.f32 %v588_v13, %v166_v6  ;;  %v590_v18 = vpop.f32.mrb[2].mxu1  ;;  %v2886_v60 = vld [vmem:[#allocation6 + $0x244] ss:$12 sps:$4 sm:$0xff]   ;;  %v2892_v6 = vld [vmem:[#allocation6 + $0x25c] ss:$12 sps:$4 sm:$0xff]  }
 0x133   :  { %v675_v4 = vmax.f32 %v546_v63, 0.0  ;;  %v550_v5 = vpop.f32.mrb[3].mxu0  ;;  %v591_v19 = vpop.f32.mrb[3].mxu1  ;;  %v677_v50 = vmax.f32 %v587_v44, 0.0  ;;  %v2884_v3 = vld [vmem:[#allocation6 + $0x240] ss:$12 sps:$4 sm:$0xff]  }
 0x134   :  { %v676_v7 = vmax.f32 %v548_v1, 0.0  ;;  %v678_v20 = vmax.f32 %v589_v17, 0.0  ;;  %v2893_v13 = vld [vmem:[#allocation8 + $0x18] ss:$12 sps:$4 sm:$0xff]   ;;  %v2899_v17 = vld [vmem:[#allocation8 + $0x30] ss:$12 sps:$4 sm:$0xff]  }
 0x135   :  { %v683_v14 = vpack.c.bf16 %v675_v4, %v675_v4  ;;  %v3264_v0 = vpack.c.bf16 %v677_v50, %v677_v50  ;;  %v2887_v4 = vld [vmem:[#allocation8] ss:$12 sps:$4 sm:$0xff]   ;;  %v2937_v44 = vld [vmem:[#allocation8 + $0xd8] ss:$12 sps:$4 sm:$0xff]  }
 0x136   :  { %v684_v9 = vpack.c.bf16 %v676_v7, %v676_v7  ;;  %v686_v25 = vpack.c.bf16 %v678_v20, %v678_v20  ;;  %v2895_v7 = vld [vmem:[#allocation8 + $0x1c] ss:$12 sps:$4 sm:$0xff]   ;;  %v2904_v18 = vld [vmem:[#allocation6 + $0x28c] ss:$12 sps:$4 sm:$0xff]  }
 0x137   :  { %v2907_v19 = vld [vmem:[#allocation8 + $0x4c] ss:$12 sps:$4 sm:$0xff]   ;;  %v2902_v20 = vld [vmem:[#allocation6 + $0x288] ss:$12 sps:$4 sm:$0xff]  }
 0x138   :  { %1380 = vmatprep.mubr.bf16.mxu0 %v684_v9  ;;  %1462 = vmatprep.mubr.bf16.mxu1 %v684_v9  ;;  %v2949_v50 = vld [vmem:[#allocation8 + $0x10c] ss:$12 sps:$4 sm:$0xff]  }
 0x139   :  { %1381 = vmatmul.mubr.bf16.vlgmr.msra.gmra.mrb[8].mxu0 %v683_v14  ;;  %1463 = vmatmul.mubr.bf16.vlgmr.msra.gmra.mrb[8].mxu1 %v683_v14  ;;  %v2898_v14 = vld [vmem:[#allocation6 + $0x274] ss:$12 sps:$4 sm:$0xff]  }
 0x13a   :  { %1390 = vmatpush1.bf16.msra.mxu0 %v2844_v11  ;;  %2694 = vmatpush3.bf16.msra.mxu1 %v2848_v12  ;;  %v2890_v12 = vld [vmem:[#allocation6 + $0x258] ss:$12 sps:$4 sm:$0xff]  }
 0x13b   :  { %1391 = vmatprep.subr.bf16.mxu0 %v2851_v15  ;;  %2695 = vmatprep.subr.bf16.mxu1 %v2852_v16  ;;  %v2901_v15 = vld [vmem:[#allocation8 + $0x34] ss:$12 sps:$4 sm:$0xff]   ;;  %v2896_v16 = vld [vmem:[#allocation6 + $0x270] ss:$12 sps:$4 sm:$0xff]  }
 0x13c   :  { %1421 = vmatprep.mubr.bf16.mxu0 %v686_v25  ;;  %1502 = vmatprep.mubr.bf16.mxu1 %v686_v25  ;;  %v2911_v25 = vld [vmem:[#allocation8 + $0x60] ss:$12 sps:$4 sm:$0xff]  }
 0x13e   :  { %1392 = vmatpush1.bf16.msra.mxu0 %v2849_v21  ;;  %2696 = vmatpush3.bf16.msra.mxu1 %v2853_v22  ;;  %v2905_v21 = vld [vmem:[#allocation8 + $0x48] ss:$12 sps:$4 sm:$0xff]   ;;  %v2910_v22 = vld [vmem:[#allocation6 + $0x2a4] ss:$12 sps:$4 sm:$0xff]  }
 0x13f   :  { %1393 = vmatprep.subr.bf16.mxu0 %v2856_v23  ;;  %2697 = vmatprep.subr.bf16.mxu1 %v2857_v24  ;;  %v2913_v23 = vld [vmem:[#allocation8 + $0x64] ss:$12 sps:$4 sm:$0xff]   ;;  %v2908_v24 = vld [vmem:[#allocation6 + $0x2a0] ss:$12 sps:$4 sm:$0xff]  }
 0x142   :  { %1394 = vmatpush1.bf16.msra.mxu0 %v2854_v10  ;;  %2698 = vmatpush3.bf16.msra.mxu1 %v2858_v26  ;;  %v2916_v10 = vld [vmem:[#allocation6 + $0x2bc] ss:$12 sps:$4 sm:$0xff]  }
 0x143   :  { %1395 = vmatprep.subr.bf16.mxu0 %v2861_v27  ;;  %2699 = vmatprep.subr.bf16.mxu1 %v2862_v28  ;;  %v2919_v26 = vld [vmem:[#allocation8 + $0x7c] ss:$12 sps:$4 sm:$0xff]   ;;  %v2914_v27 = vld [vmem:[#allocation6 + $0x2b8] ss:$12 sps:$4 sm:$0xff]  }
 0x144   :  { %v2917_v28 = vld [vmem:[#allocation8 + $0x78] ss:$12 sps:$4 sm:$0xff]  }
 0x146   :  { %1396 = vmatpush1.bf16.msra.mxu0 %v2859_v29  ;;  %2700 = vmatpush3.bf16.msra.mxu1 %v2863_v30  ;;  %v2922_v29 = vld [vmem:[#allocation6 + $0x2d4] ss:$12 sps:$4 sm:$0xff]  }
 0x147   :  { %1397 = vmatprep.subr.bf16.mxu0 %v2866_v31  ;;  %2701 = vmatprep.subr.bf16.mxu1 %v2867_v32  ;;  %v2925_v30 = vld [vmem:[#allocation8 + $0x94] ss:$12 sps:$4 sm:$0xff]   ;;  %v2920_v31 = vld [vmem:[#allocation6 + $0x2d0] ss:$12 sps:$4 sm:$0xff]  }
 0x148   :  { %v2923_v32 = vld [vmem:[#allocation8 + $0x90] ss:$12 sps:$4 sm:$0xff]  }
 0x14a   :  { %1398 = vmatpush1.bf16.msra.mxu0 %v2864_v34  ;;  %2702 = vmatpush3.bf16.msra.mxu1 %v2868_v35  ;;  %v2928_v34 = vld [vmem:[#allocation6 + $0x2ec] ss:$12 sps:$4 sm:$0xff]  }
 0x14b   :  { %1399 = vmatprep.subr.bf16.mxu0 %v2871_v36  ;;  %2703 = vmatprep.subr.bf16.mxu1 %v2872_v37  ;;  %v2931_v35 = vld [vmem:[#allocation8 + $0xac] ss:$12 sps:$4 sm:$0xff]   ;;  %v2926_v36 = vld [vmem:[#allocation6 + $0x2e8] ss:$12 sps:$4 sm:$0xff]  }
 0x14c   :  { %v2929_v37 = vld [vmem:[#allocation8 + $0xa8] ss:$12 sps:$4 sm:$0xff]  }
 0x14e   :  { %1400 = vmatpush1.bf16.msra.mxu0 %v2869_v39  ;;  %2704 = vmatpush3.bf16.msra.mxu1 %v2873_v40  ;;  %v2935_v39 = vld [vmem:[#allocation8 + $0xc8] ss:$12 sps:$4 sm:$0xff]   ;;  %v2932_v40 = vld [vmem:[#allocation8 + $0xc0] ss:$12 sps:$4 sm:$0xff]  }
 0x14f   :  { %1401 = vmatprep.subr.bf16.mxu0 %v2876_v42  ;;  %2705 = vmatprep.subr.bf16.mxu1 %v2877_v43  ;;  %v2939_v42 = vld [vmem:[#allocation8 + $0xdc] ss:$12 sps:$4 sm:$0xff]   ;;  %v2940_v43 = vld [vmem:[#allocation8 + $0xe0] ss:$12 sps:$4 sm:$0xff]  }
 0x150   :  { %v3262_v49 = vpop.f32.mrb[4].mxu0 }
 0x151   :  { %v629_v51 = vpop.f32.mrb[5].mxu0  ;;  %v3266_v1 = vpop.f32.mrb[4].mxu1 }
 0x152   :  { %1402 = vmatpush1.bf16.msra.mxu0 %v2874_v45  ;;  %2706 = vmatpush3.bf16.msra.mxu1 %v2878_v2  ;;  %v630_v54 = vadd.f32 %v629_v51, %v174_v46  ;;  %v631_v59 = vpop.f32.mrb[6].mxu0  ;;  %v3268_v5 = vpop.f32.mrb[5].mxu1  ;;  %v2941_v45 = vld [vmem:[#allocation8 + $0x20] ss:$12 sps:$4 sm:$0xff]   ;;  %v2945_v46 = vld [vmem:[#allocation8 + $0xf8] ss:$12 sps:$4 sm:$0xff]  }
 0x153   :  { %1403 = vmatprep.subr.bf16.mxu0 %v2881_v47  ;;  %2707 = vmatprep.subr.bf16.mxu1 %v2882_v48  ;;  %v632_v62 = vpop.f32.mrb[7].mxu0  ;;  %v672_v8 = vpop.f32.mrb[6].mxu1  ;;  %v2944_v2 = vld [vmem:[#allocation8 + $0xf4] ss:$12 sps:$4 sm:$0xff]   ;;  %v2942_v47 = vld [vmem:[#allocation8 + $0xf0] ss:$12 sps:$4 sm:$0xff]  }
 0x154   :  { %v680_v63 = vmax.f32 %v630_v54, 0.0  ;;  %v673_v11 = vpop.f32.mrb[7].mxu1  ;;  %v2946_v48 = vld [vmem:[#allocation8 + $0x38] ss:$12 sps:$4 sm:$0xff]   ;;  %v2950_v51 = vld [vmem:[#allocation8 + $0x110] ss:$12 sps:$4 sm:$0xff]  }
 0x155   :  { %v2954_v54 = vld [vmem:[#allocation8 + $0x124] ss:$12 sps:$4 sm:$0xff]   ;;  %v2955_v59 = vld [vmem:[#allocation8 + $0x128] ss:$12 sps:$4 sm:$0xff]  }
 0x156   :  { %1404 = vmatpush1.bf16.msra.mxu0 %v2879_v52  ;;  %2708 = vmatpush3.bf16.msra.mxu1 %v2883_v53  ;;  %v3270_v9 = vpack.c.bf16 %v680_v63, %v680_v63  ;;  %v2947_v52 = vld [vmem:[#allocation8 + $0x108] ss:$12 sps:$4 sm:$0xff]   ;;  %v2951_v53 = vld [vmem:[#allocation8 + $0x50] ss:$12 sps:$4 sm:$0xff]  }
 0x157   :  { %1405 = vmatprep.subr.bf16.mxu0 %v2886_v60  ;;  %2170 = vmatprep.subr.bf16.mxu1 %v2889_v61  ;;  %v169_v60 = vsub.s32 4, %v3236_v55  ;;  %v2952_v61 = vld [vmem:[#allocation8 + $0x120] ss:$12 sps:$4 sm:$0xff]   ;;  %v2956_v62 = vld [vmem:[#allocation8 + $0x68] ss:$12 sps:$4 sm:$0xff]  }
 0x158   :  { %v2959_v63 = vld [vmem:[#allocation8 + $0x13c] ss:$12 sps:$4 sm:$0xff]   ;;  %v2964_v8 = vld [vmem:[#allocation8 + $0x154] ss:$12 sps:$4 sm:$0xff]  }
 0x159   :  { %1503 = vmatmul.mubr.bf16.vlgmr.msra.gmra.mrb[12].mxu1 %v3264_v0 }
 0x15a   :  { %1406 = vmatpush1.bf16.msra.mxu0 %v2884_v3  ;;  %2171 = vmatpush1.bf16.msra.mxu1 %v2887_v4  ;;  %v181_v3 = vsub.s32 7, %v3236_v55  ;;  %v170_v4 = vrot.slane %v3244_v57, %v169_v60  ;;  %v3014_v60 = vld [vmem:[#allocation8 + $0x244] ss:$12 sps:$4 sm:$0xff]  }
 0x15b   :  { %1407 = vmatprep.subr.bf16.mxu0 %v2892_v6  ;;  %2172 = vmatprep.subr.bf16.mxu1 %v2895_v7  ;;  %v2957_v6 = vld [vmem:[#allocation8 + $0x138] ss:$12 sps:$4 sm:$0xff]   ;;  %v2961_v7 = vld [vmem:[#allocation8 + $0x80] ss:$12 sps:$4 sm:$0xff]  }
 0x15c   :  { %2202 = vmatprep.mubr.bf16.mxu1 %v3270_v9  ;;  %v182_v11 = vrot.slane %v3244_v57, %v181_v3  ;;  %v3018_v3 = vld [vmem:[#allocation8 + $0x270] ss:$12 sps:$4 sm:$0xff]  }
 0x15e   :  { %1408 = vmatpush1.bf16.msra.mxu0 %v2890_v12  ;;  %2173 = vmatpush1.bf16.msra.mxu1 %v2893_v13  ;;  %v628_v12 = vadd.f32 %v3262_v49, %v170_v4  ;;  %v2962_v13 = vld [vmem:[#allocation8 + $0x150] ss:$12 sps:$4 sm:$0xff]   ;;  %v3023_v4 = vld [vmem:[#allocation8 + $0x28c] ss:$12 sps:$4 sm:$0xff]  }
 0x15f   :  { %1409 = vmatprep.subr.bf16.mxu0 %v2898_v14  ;;  %2174 = vmatprep.subr.bf16.mxu1 %v2901_v15  ;;  %v2966_v14 = vld [vmem:[#allocation8 + $0x98] ss:$12 sps:$4 sm:$0xff]  }
 0x160   :  { %v2969_v15 = vld [vmem:[#allocation8 + $0x16c] ss:$12 sps:$4 sm:$0xff]  }
 0x162   :  { %1410 = vmatpush1.bf16.msra.mxu0 %v2896_v16  ;;  %2175 = vmatpush1.bf16.msra.mxu1 %v2899_v17  ;;  %v2970_v16 = vld [vmem:[#allocation8 + $0x170] ss:$12 sps:$4 sm:$0xff]   ;;  %v671_v17 = vadd.f32 %v3268_v5, %v182_v11  ;;  %v3027_v11 = vld [vmem:[#allocation8 + $0x2b8] ss:$12 sps:$4 sm:$0xff]  }
 0x163   :  { %1411 = vmatprep.subr.bf16.mxu0 %v2904_v18  ;;  %2176 = vmatprep.subr.bf16.mxu1 %v2907_v19  ;;  %v679_v18 = vmax.f32 %v628_v12, 0.0  ;;  %v2967_v19 = vld [vmem:[#allocation8 + $0x168] ss:$12 sps:$4 sm:$0xff]  }
 0x164   :  { %v682_v49 = vmax.f32 %v671_v17, 0.0  ;;  %v3032_v12 = vld [vmem:[#allocation8 + $0x2d4] ss:$12 sps:$4 sm:$0xff]  }
 0x166   :  { %1412 = vmatpush1.bf16.msra.mxu0 %v2902_v20  ;;  %2177 = vmatpush1.bf16.msra.mxu1 %v2905_v21  ;;  %v2971_v20 = vld [vmem:[#allocation8 + $0xb0] ss:$12 sps:$4 sm:$0xff]   ;;  %v690_v5 = vpack.c.bf16 %v682_v49, %v682_v49 }
 0x167   :  { %1413 = vmatprep.subr.bf16.mxu0 %v2910_v22  ;;  %2178 = vmatprep.subr.bf16.mxu1 %v2913_v23  ;;  %v2974_v21 = vld [vmem:[#allocation8 + $0x184] ss:$12 sps:$4 sm:$0xff]   ;;  %v2975_v22 = vld [vmem:[#allocation8 + $0x248] ss:$12 sps:$4 sm:$0xff]   ;;  %v687_v23 = vpack.c.bf16 %v679_v18, %v679_v18 }
 0x16a   :  { %1414 = vmatpush1.bf16.msra.mxu0 %v2908_v24  ;;  %2179 = vmatpush1.bf16.msra.mxu1 %v2911_v25  ;;  %v2972_v24 = vld [vmem:[#allocation8 + $0x180] ss:$12 sps:$4 sm:$0xff]   ;;  %v2976_v25 = vld [vmem:[#allocation8 + $0x188] ss:$12 sps:$4 sm:$0xff]  }
 0x16b   :  { %1415 = vmatprep.subr.bf16.mxu0 %v2916_v10  ;;  %2180 = vmatprep.subr.bf16.mxu1 %v2919_v26  ;;  %v2979_v10 = vld [vmem:[#allocation8 + $0x19c] ss:$12 sps:$4 sm:$0xff]   ;;  %v2980_v26 = vld [vmem:[#allocation8 + $0x260] ss:$12 sps:$4 sm:$0xff]  }
 0x16e   :  { %1416 = vmatpush1.bf16.msra.mxu0 %v2914_v27  ;;  %2181 = vmatpush1.bf16.msra.mxu1 %v2917_v28  ;;  %v2977_v27 = vld [vmem:[#allocation8 + $0x198] ss:$12 sps:$4 sm:$0xff]   ;;  %v2981_v28 = vld [vmem:[#allocation8 + $0x1a0] ss:$12 sps:$4 sm:$0xff]  }
 0x16f   :  { %1417 = vmatprep.subr.bf16.mxu0 %v2922_v29  ;;  %2182 = vmatprep.subr.bf16.mxu1 %v2925_v30  ;;  %v2984_v29 = vld [vmem:[#allocation8 + $0x1b4] ss:$12 sps:$4 sm:$0xff]   ;;  %v2985_v30 = vld [vmem:[#allocation8 + $0x278] ss:$12 sps:$4 sm:$0xff]  }
 0x172   :  { %1418 = vmatpush1.bf16.msra.mxu0 %v2920_v31  ;;  %2183 = vmatpush1.bf16.msra.mxu1 %v2923_v32  ;;  %v2982_v31 = vld [vmem:[#allocation8 + $0x1b0] ss:$12 sps:$4 sm:$0xff]   ;;  %v2986_v32 = vld [vmem:[#allocation8 + $0x1b8] ss:$12 sps:$4 sm:$0xff]  }
 0x173   :  { %1419 = vmatprep.subr.bf16.mxu0 %v2928_v34  ;;  %2184 = vmatprep.subr.bf16.mxu1 %v2931_v35  ;;  %v2989_v34 = vld [vmem:[#allocation8 + $0x1cc] ss:$12 sps:$4 sm:$0xff]   ;;  %v2990_v35 = vld [vmem:[#allocation8 + $0x290] ss:$12 sps:$4 sm:$0xff]  }
 0x176   :  { %1420 = vmatpush1.bf16.msra.mxu0 %v2926_v36  ;;  %2185 = vmatpush1.bf16.msra.mxu1 %v2929_v37  ;;  %v2987_v36 = vld [vmem:[#allocation8 + $0x1c8] ss:$12 sps:$4 sm:$0xff]   ;;  %v2991_v37 = vld [vmem:[#allocation8 + $0x1d0] ss:$12 sps:$4 sm:$0xff]  }
 0x177   :  { %2186 = vmatprep.subr.bf16.mxu1 %v2934_v38  ;;  %2715 = vmatprep.subr.bf16.mxu0 %v2935_v39  ;;  %v2994_v38 = vld [vmem:[#allocation8 + $0x1e4] ss:$12 sps:$4 sm:$0xff]   ;;  %v2995_v39 = vld [vmem:[#allocation8 + $0x2a8] ss:$12 sps:$4 sm:$0xff]  }
 0x179   :  { %1422 = vmatmul.mubr.bf16.vlgmr.msra.gmra.mrb[8].mxu0 %v3264_v0  ;;  %v2960_v0 = vld [vmem:[#allocation8 + $0x140] ss:$12 sps:$4 sm:$0xff]  }
 0x17a   :  { %2187 = vmatpush1.bf16.msra.mxu1 %v2932_v40  ;;  %2716 = vmatpush3.bf16.msra.mxu0 %v2936_v41  ;;  %v177_v40 = vsub.s32 6, %v3236_v55  ;;  %v2992_v41 = vld [vmem:[#allocation8 + $0x1e0] ss:$12 sps:$4 sm:$0xff]  }
 0x17b   :  { %2188 = vmatprep.subr.bf16.mxu1 %v2939_v42  ;;  %2717 = vmatprep.subr.bf16.mxu0 %v2940_v43  ;;  %v2996_v42 = vld [vmem:[#allocation8 + $0x1e8] ss:$12 sps:$4 sm:$0xff]  }
 0x17c   :  { %2284 = vmatprep.mubr.bf16.mxu0 %v3270_v9  ;;  %v2965_v9 = vld [vmem:[#allocation8 + $0x158] ss:$12 sps:$4 sm:$0xff]   ;;  %v2999_v43 = vld [vmem:[#allocation8 + $0x1fc] ss:$12 sps:$4 sm:$0xff]  }
 0x17e   :  { %2189 = vmatpush1.bf16.msra.mxu1 %v2937_v44  ;;  %2718 = vmatpush3.bf16.msra.mxu0 %v2941_v45  ;;  %v3000_v44 = vld [vmem:[#allocation8 + $0x2c0] ss:$12 sps:$4 sm:$0xff]   ;;  %v178_v45 = vrot.slane %v3244_v57, %v177_v40  ;;  %v3007_v57 = vld [vmem:[#allocation8 + $0x228] ss:$12 sps:$4 sm:$0xff]  }
 0x17f   :  { %2190 = vmatprep.subr.bf16.mxu1 %v2944_v2  ;;  %2719 = vmatprep.subr.bf16.mxu0 %v2945_v46  ;;  %v2997_v2 = vld [vmem:[#allocation8 + $0x1f8] ss:$12 sps:$4 sm:$0xff]   ;;  %v3001_v46 = vld [vmem:[#allocation8 + $0x200] ss:$12 sps:$4 sm:$0xff]  }
 0x180   :  { %v669_v55 = vadd.f32 %v3266_v1, %v178_v45  ;;  %v3012_v1 = vld [vmem:[#allocation8 + $0x240] ss:$12 sps:$4 sm:$0xff]  }
 0x182   :  { %2191 = vmatpush1.bf16.msra.mxu1 %v2942_v47  ;;  %2720 = vmatpush3.bf16.msra.mxu0 %v2946_v48  ;;  %v3004_v47 = vld [vmem:[#allocation8 + $0x214] ss:$12 sps:$4 sm:$0xff]   ;;  %v3005_v48 = vld [vmem:[#allocation8 + $0x2d8] ss:$12 sps:$4 sm:$0xff]  }
 0x183   :  { %2192 = vmatprep.subr.bf16.mxu1 %v2949_v50  ;;  %2721 = vmatprep.subr.bf16.mxu0 %v2950_v51  ;;  %v3002_v50 = vld [vmem:[#allocation8 + $0x210] ss:$12 sps:$4 sm:$0xff]   ;;  %v3006_v51 = vld [vmem:[#allocation8 + $0x218] ss:$12 sps:$4 sm:$0xff]  }
 0x186   :  { %2193 = vmatpush1.bf16.msra.mxu1 %v2947_v52  ;;  %2722 = vmatpush3.bf16.msra.mxu0 %v2951_v53  ;;  %v3009_v52 = vld [vmem:[#allocation8 + $0x22c] ss:$12 sps:$4 sm:$0xff]   ;;  %v3010_v53 = vld [vmem:[#allocation8 + $0x2f0] ss:$12 sps:$4 sm:$0xff]  }
 0x187   :  { %2194 = vmatprep.subr.bf16.mxu1 %v2954_v54  ;;  %2723 = vmatprep.subr.bf16.mxu0 %v2955_v59  ;;  %v681_v54 = vmax.f32 %v669_v55, 0.0  ;;  %v3011_v59 = vld [vmem:[#allocation8 + $0x230] ss:$12 sps:$4 sm:$0xff]  }
 0x18a   :  { %2195 = vmatpush1.bf16.msra.mxu1 %v2952_v61  ;;  %2724 = vmatpush3.bf16.msra.mxu0 %v2956_v62  ;;  %v689_v61 = vpack.c.bf16 %v681_v54, %v681_v54  ;;  %v3017_v62 = vld [vmem:[#allocation8 + $0x25c] ss:$12 sps:$4 sm:$0xff]  }
 0x18b   :  { %2196 = vmatprep.subr.bf16.mxu1 %v2959_v63  ;;  %2725 = vmatprep.subr.bf16.mxu0 %v2960_v0  ;;  %v3015_v63 = vld [vmem:[#allocation8 + $0x258] ss:$12 sps:$4 sm:$0xff]   ;;  %v3020_v0 = vld [vmem:[#allocation8 + $0x274] ss:$12 sps:$4 sm:$0xff]  }
 0x18e   :  { %2197 = vmatpush1.bf16.msra.mxu1 %v2957_v6  ;;  %2726 = vmatpush3.bf16.msra.mxu0 %v2961_v7  ;;  %v3021_v6 = vld [vmem:[#allocation8 + $0x288] ss:$12 sps:$4 sm:$0xff]   ;;  %v3026_v7 = vld [vmem:[#allocation8 + $0x2a4] ss:$12 sps:$4 sm:$0xff]  }
 0x18f   :  { %2198 = vmatprep.subr.bf16.mxu1 %v2964_v8  ;;  %2727 = vmatprep.subr.bf16.mxu0 %v2965_v9  ;;  %v3024_v8 = vld [vmem:[#allocation8 + $0x2a0] ss:$12 sps:$4 sm:$0xff]   ;;  %v3029_v9 = vld [vmem:[#allocation8 + $0x2bc] ss:$12 sps:$4 sm:$0xff]  }
 0x192   :  { %2199 = vmatpush1.bf16.msra.mxu1 %v2962_v13  ;;  %2728 = vmatpush3.bf16.msra.mxu0 %v2966_v14  ;;  %v3030_v13 = vld [vmem:[#allocation8 + $0x2d0] ss:$12 sps:$4 sm:$0xff]   ;;  %v3035_v14 = vld [vmem:[#allocation8 + $0x2ec] ss:$12 sps:$4 sm:$0xff]  }
 0x193   :  { %2200 = vmatprep.subr.bf16.mxu1 %v2969_v15  ;;  %2729 = vmatprep.subr.bf16.mxu0 %v2970_v16  ;;  %v3033_v15 = vld [vmem:[#allocation8 + $0x2e8] ss:$12 sps:$4 sm:$0xff]  }
 0x196   :  { %2201 = vmatpush1.bf16.msra.mxu1 %v2967_v19  ;;  %2730 = vmatpush3.bf16.msra.mxu0 %v2971_v20 }
 0x197   :  { %2211 = vmatprep.subr.bf16.mxu1 %v2974_v21  ;;  %2737 = vmatprep.subr.bf16.mxu0 %v2975_v22  ;;  %v819_v21 = vld [vmem:[%s3316_s4] sm:$0x7] }
 0x198   :  { %v832_v22 = vrot.slane %v819_v21, %v3256_v33 }
 0x199   :  { %2203 = vmatmul.mubr.bf16.vlgmr.msra.gmra.mrb[16].mxu1 %v687_v23  ;;  %2285 = vmatmul.mubr.bf16.vlgmr.msra.gmra.mrb[12].mxu0 %v687_v23 }
 0x19a   :  { %2212 = vmatpush1.bf16.msra.mxu1 %v2972_v24  ;;  %2738 = vmatpush3.bf16.msra.mxu0 %v2976_v25 }
 0x19b   :  { %2213 = vmatprep.subr.bf16.mxu1 %v2979_v10  ;;  %2739 = vmatprep.subr.bf16.mxu0 %v2980_v26 }
 0x19c   :  { %2324 = vmatprep.mubr.bf16.mxu0 %v690_v5  ;;  %2243 = vmatprep.mubr.bf16.mxu1 %v690_v5 }
 0x19e   :  { %2214 = vmatpush1.bf16.msra.mxu1 %v2977_v27  ;;  %2740 = vmatpush3.bf16.msra.mxu0 %v2981_v28  ;;  %v824_v27 = vrot.slane %v819_v21, %v3239_v56  ;;  %v828_v28 = vrot.slane %v819_v21, %v3247_v58 }
 0x19f   :  { %2215 = vmatprep.subr.bf16.mxu1 %v2984_v29  ;;  %2741 = vmatprep.subr.bf16.mxu0 %v2985_v30  ;;  %v2335_v30 = vld [vmem:[%s3319_s7] sm:$0x7] }
 0x1a2   :  { %2216 = vmatpush1.bf16.msra.mxu1 %v2982_v31  ;;  %2742 = vmatpush3.bf16.msra.mxu0 %v2986_v32  ;;  %v2340_v32 = vrot.slane %v2335_v30, %v3239_v56 }
 0x1a3   :  { %2217 = vmatprep.subr.bf16.mxu1 %v2989_v34  ;;  %2743 = vmatprep.subr.bf16.mxu0 %v2990_v35 }
 0x1a6   :  { %2218 = vmatpush1.bf16.msra.mxu1 %v2987_v36  ;;  %2744 = vmatpush3.bf16.msra.mxu0 %v2991_v37  ;;  %v2344_v36 = vrot.slane %v2335_v30, %v3247_v58 }
 0x1a7   :  { %2219 = vmatprep.subr.bf16.mxu1 %v2994_v38  ;;  %2745 = vmatprep.subr.bf16.mxu0 %v2995_v39 }
 0x1aa   :  { %2220 = vmatpush1.bf16.msra.mxu1 %v2992_v41  ;;  %2746 = vmatpush3.bf16.msra.mxu0 %v2996_v42  ;;  %v2348_v42 = vrot.slane %v2335_v30, %v3256_v33 }
 0x1ab   :  { %2221 = vmatprep.subr.bf16.mxu1 %v2999_v43  ;;  %2747 = vmatprep.subr.bf16.mxu0 %v3000_v44 }
 0x1ae   :  { %2222 = vmatpush1.bf16.msra.mxu1 %v2997_v2  ;;  %2748 = vmatpush3.bf16.msra.mxu0 %v3001_v46 }
 0x1af   :  { %2223 = vmatprep.subr.bf16.mxu1 %v3004_v47  ;;  %2749 = vmatprep.subr.bf16.mxu0 %v3005_v48 }
 0x1b2   :  { %2224 = vmatpush1.bf16.msra.mxu1 %v3002_v50  ;;  %2750 = vmatpush3.bf16.msra.mxu0 %v3006_v51 }
 0x1b3   :  { %2225 = vmatprep.subr.bf16.mxu1 %v3009_v52  ;;  %2751 = vmatprep.subr.bf16.mxu0 %v3010_v53  ;;  %v1641_v52 = vld [vmem:[%s3318_s6] sm:$0x7]  ;;  %s3114_s6 = smov 1  }
 0x1b4   :  { %v1654_v53 = vrot.slane %v1641_v52, %v3256_v33 }
 0x1b6   :  { %2226 = vmatpush1.bf16.msra.mxu1 %v3007_v57  ;;  %2752 = vmatpush3.bf16.msra.mxu0 %v3011_v59 }
 0x1b7   :  { %2227 = vmatprep.subr.bf16.mxu1 %v3014_v60 }
 0x1b9   :  { %2325 = vmatmul.mubr.bf16.vlgmr.msra.gmra.mrb[16].mxu0 %v689_v61 }
 0x1ba   :  { %2228 = vmatpush1.bf16.msra.mxu1 %v3012_v1 }
 0x1bb   :  { %2229 = vmatprep.subr.bf16.mxu1 %v3017_v62 }
 0x1be   :  { %2230 = vmatpush1.bf16.msra.mxu1 %v3015_v63  ;;  %v1646_v63 = vrot.slane %v1641_v52, %v3239_v56 }
 0x1bf   :  { %2231 = vmatprep.subr.bf16.mxu1 %v3020_v0  ;;  %v1650_v0 = vrot.slane %v1641_v52, %v3247_v58 }
 0x1c2   :  { %2232 = vmatpush1.bf16.msra.mxu1 %v3018_v3 }
 0x1c3   :  { %2233 = vmatprep.subr.bf16.mxu1 %v3023_v4  ;;  %v2367_v4 = vld [vmem:[%s3321_s9] sm:$0x7] }
 0x1c6   :  { %2234 = vmatpush1.bf16.msra.mxu1 %v3021_v6 }
 0x1c7   :  { %2235 = vmatprep.subr.bf16.mxu1 %v3026_v7  ;;  %v2372_v7 = vrot.slane %v2367_v4, %v3239_v56 }
 0x1ca   :  { %2236 = vmatpush1.bf16.msra.mxu1 %v3024_v8 }
 0x1cb   :  { %2237 = vmatprep.subr.bf16.mxu1 %v3029_v9 }
 0x1ce   :  { %2238 = vmatpush1.bf16.msra.mxu1 %v3027_v11  ;;  %v2376_v11 = vrot.slane %v2367_v4, %v3247_v58  ;;  %v2669_v58 = vld [vmem:[#allocation2] ss:$0 sm:$0xff] }
 0x1cf   :  { %2239 = vmatprep.subr.bf16.mxu1 %v3032_v12 }
 0x1d2   :  { %2240 = vmatpush1.bf16.msra.mxu1 %v3030_v13 }
 0x1d3   :  { %2241 = vmatprep.subr.bf16.mxu1 %v3035_v14 }
 0x1d6   :  { %2242 = vmatpush1.bf16.msra.mxu1 %v3033_v15 }
 0x1d9   :  { %2244 = vmatmul.mubr.bf16.vlgmr.msra.gmra.mrb[16].mxu1 %v689_v61 }
 0x20c   :  { %v2687_v16 = vpop.f32.mrb[8].mxu1 }
 0x20d   :  { %v2688_v17 = vpop.f32.mrb[9].mxu1 }
 0x20e   :  { %v2689_v18 = vadd.f32 %v2688_v17, %v2687_v16  ;;  %v2690_v19 = vpop.f32.mrb[10].mxu1  ;;  %v2380_v17 = vrot.slane %v2367_v4, %v3256_v33 }
 0x20f   :  { %v2691_v20 = vpop.f32.mrb[11].mxu1 }
 0x210   :  { %v1465_v24 = vadd.f32 %v2689_v18, %v832_v22 }
 0x22c   :  { %v2709_v49 = vpop.f32.mrb[12].mxu1 }
 0x22d   :  { %v2710_v23 = vpop.f32.mrb[13].mxu1 }
 0x22e   :  { %v2711_v25 = vadd.f32 %v2710_v23, %v2709_v49  ;;  %v2712_v10 = vpop.f32.mrb[14].mxu1  ;;  %v2670_v49 = vld [vmem:[#allocation3] ss:$0 sm:$0xff] }
 0x22f   :  { %v2713_v26 = vpop.f32.mrb[15].mxu1 }
 0x230   :  { %v1505_v5 = vadd.f32 %v2711_v25, %v1465_v24 }
 0x232   :  { %v1512_v40 = vmax.f32 %v1505_v5, 0.0 }
 0x234   :  { %v2354_v45 = vmul.f32 %v2348_v42, %v1512_v40 }
 0x24c   :  { %v1423_v29 = vpop.f32.mrb[8].mxu0 }
 0x24d   :  { %v2759_v31 = vadd.f32 %v1423_v29, %v824_v27  ;;  %v1425_v34 = vpop.f32.mrb[9].mxu0 }
 0x24e   :  { %v2760_v35 = vadd.f32 %v1425_v34, %v828_v28  ;;  %v1427_v37 = vpop.f32.mrb[10].mxu0 }
 0x24f   :  { %v1510_v38 = vmax.f32 %v2759_v31, 0.0  ;;  %v1428_v39 = vpop.f32.mrb[11].mxu0 }
 0x250   :  { %v1511_v41 = vmax.f32 %v2760_v35, 0.0 }
 0x251   :  { %v2352_v43 = vmul.f32 %v2340_v32, %v1510_v38 }
 0x252   :  { %v2353_v44 = vmul.f32 %v2344_v36, %v1511_v41 }
 0x254   :  { %v2355_v2 = vadd.f32 %v2353_v44, %v2352_v43 }
 0x256   :  { %v2356_v46 = vadd.f32 %v2355_v2, %v2354_v45 }
 0x26c   :  { %v2731_v47 = vpop.f32.mrb[12].mxu0 }
 0x26d   :  { %v2732_v48 = vpop.f32.mrb[13].mxu0 }
 0x26e   :  { %v2733_v55 = vadd.f32 %v2732_v48, %v2731_v47  ;;  %v2734_v50 = vpop.f32.mrb[14].mxu0 }
 0x26f   :  { %v2735_v51 = vpop.f32.mrb[15].mxu0 }
 0x270   :  { %v2287_v59 = vadd.f32 %v2733_v55, %v1654_v53 }
 0x28c   :  { %v2753_v54 = vpop.f32.mrb[16].mxu0 }
 0x28d   :  { %v2754_v57 = vpop.f32.mrb[17].mxu0 }
 0x28e   :  { %v2755_v60 = vadd.f32 %v2754_v57, %v2753_v54  ;;  %v2756_v61 = vpop.f32.mrb[18].mxu0 }
 0x28f   :  { %v2757_v1 = vpop.f32.mrb[19].mxu0 }
 0x290   :  { %v2327_v62 = vadd.f32 %v2755_v60, %v2287_v59 }
 0x292   :  { %v2334_v15 = vmax.f32 %v2327_v62, 0.0 }
 0x294   :  { %v2386_v20 = vmul.f32 %v2380_v17, %v2334_v15 }
 0x2ac   :  { %v2245_v3 = vpop.f32.mrb[16].mxu1 }
 0x2ad   :  { %v2761_v6 = vadd.f32 %v2245_v3, %v1646_v63  ;;  %v2247_v8 = vpop.f32.mrb[17].mxu1 }
 0x2ae   :  { %v2762_v9 = vadd.f32 %v2247_v8, %v1650_v0  ;;  %v2249_v12 = vpop.f32.mrb[18].mxu1 }
 0x2af   :  { %v2332_v13 = vmax.f32 %v2761_v6, 0.0  ;;  %v2250_v14 = vpop.f32.mrb[19].mxu1 }
 0x2b0   :  { %v2333_v16 = vmax.f32 %v2762_v9, 0.0 }
 0x2b1   :  { %v2384_v18 = vmul.f32 %v2372_v7, %v2332_v13 }
 0x2b2   :  { %v2385_v19 = vmul.f32 %v2376_v11, %v2333_v16 }
 0x2b4   :  { %v2387_v21 = vadd.f32 %v2385_v19, %v2384_v18 }
 0x2b6   :  { %v2388_v22 = vadd.f32 %v2387_v21, %v2386_v20 }
 0x2b8   :  { %2389 = vadd.xlane.f32.xlu0 %v2388_v22 }
 0x2bc   :  { %2357 = vadd.xlane.f32.xlu0 %v2356_v46 }
 0x345   :  { %v2390_v56 = vpop.xlane.xlu0 %2389 }
 0x346   :  { %v2398_v23 = vadd.f32 %v2670_v49, %v2390_v56 }
 0x348   :  { %2400 = vrot.lane.b32.xlu1 %v2398_v23, %s3114_s6 }
 0x349   :  { %v2358_v24 = vpop.xlane.xlu0 %2357 }
 0x34a   :  { %v2366_v25 = vadd.f32 %v2669_v58, %v2358_v24 }
 0x3ba   :  { %v2401_v10 = vpop.permute.xlu1 %2400 }
 0x3bb   :  { %v2404_v26 = vsel %vm2403_vm0, %v2366_v25, %v2401_v10 }
 0x3bc   :  { %2406 = vst.msk [vmem:[%s3322_s11] sm:$0xff] %vm2405_vm1, %v2404_v26 }
 0x3bd   :  { %2411 = vsyncpa [#allocation5], 1 }
 0x3be   :  { %2412 = vsyncpa [#allocation7], 1 }

</bundles_post_ra>
